<compile_context>
chip_gen: v5e
topology: v5e:2x2
jax: 0.10.0
libtpu: 0.0.40
codegen_flags: <defaults>
</compile_context>

<pallas_src>
from functools import partial
from typing import NamedTuple

import jax
import jax.numpy as jnp
from jax.experimental import pallas as pl
from jax.experimental.pallas import tpu as pltpu

_LANE = 128
_FUSED_VMEM_BUDGET = 24 << 20   # above this working set, switch to the row-tiled plan


def _round_up(x, m):
    return (x + m - 1) // m * m


def _pad2(a, rows, cols):
    return jnp.pad(a, ((0, rows - a.shape[0]), (0, cols - a.shape[1])))


def _vmem_limit(bytes_needed):
    # Headroom for Mosaic scratch; stay under the smallest physical VMEM (v7x: 64 MiB).
    return int(min(max(2 * bytes_needed + (4 << 20), 16 << 20), 60 << 20))


# ----------------------------- Pallas kernels --------------------------------

def _log_softmax_2cls(logits):
    # log_softmax over the 2 real class columns as an explicit 2-term logsumexp
    # (pure VPU/EUP, no XLU cross-lane reduce over a nearly-empty vreg).
    l0 = logits[:, 0:1]
    l1 = logits[:, 1:2]
    m = jnp.maximum(l0, l1)
    lse = m + jnp.log(jnp.exp(l0 - m) + jnp.exp(l1 - m))
    return logits - lse


def _gcn_fused_kernel(adj_ref, s1_ref, b1_ref, rhs2_ref, bias2_ref,
                      x2_ref, logp_ref, *, e_p):
    """Small-graph plan: adj VMEM-resident, both adj passes + head in one kernel.

    h  = relu(adj @ s1 + b1)                      (s1 = x @ W1, computed in the wrapper)
    y  = adj @ (h @ [W2 | W2 Wl]) + [b2 | b2 Wl + bl]   ->  [x2 | logits]
    """
    adj = adj_ref[...]                            # (Np, Np) bf16, loaded once, reused
    cd = adj.dtype
    h = jnp.dot(adj, s1_ref[...], preferred_element_type=jnp.float32)
    h = jnp.maximum(h + b1_ref[...], 0.0)         # f32 bias + ReLU
    # TODO(synk): training-mode dropout (pltpu.prng_seed + stateful_bernoulli mask).
    s2 = jnp.dot(h.astype(cd), rhs2_ref[...], preferred_element_type=jnp.float32)
    y = jnp.dot(adj, s2.astype(cd), preferred_element_type=jnp.float32) + bias2_ref[...]
    x2_ref[...] = y[:, :e_p].astype(x2_ref.dtype)
    logp_ref[...] = _log_softmax_2cls(y[:, e_p:]).astype(logp_ref.dtype)


def _gcn_phase_a_kernel(adj_ref, s1_ref, b1_ref, rhs2_ref, s2_ref):
    """Row-tiled pass 1: s2_rows = relu(adj_rows @ s1 + b1) @ [W2 | W2 Wl]."""
    h = jnp.dot(adj_ref[...], s1_ref[...], preferred_element_type=jnp.float32)
    h = jnp.maximum(h + b1_ref[...], 0.0)
    s2_ref[...] = jnp.dot(h.astype(rhs2_ref.dtype), rhs2_ref[...],
                          preferred_element_type=jnp.float32).astype(s2_ref.dtype)


def _gcn_phase_b_kernel(adj_ref, s2_ref, bias2_ref, x2_ref, logp_ref, *, e_p):
    """Row-tiled pass 2: [x2 | logits]_rows = adj_rows @ s2 + bias; log_softmax head."""
    y = jnp.dot(adj_ref[...], s2_ref[...],
                preferred_element_type=jnp.float32) + bias2_ref[...]
    x2_ref[...] = y[:, :e_p].astype(x2_ref.dtype)
    logp_ref[...] = _log_softmax_2cls(y[:, e_p:]).astype(logp_ref.dtype)


# ------------------------------ setup + wrapper -------------------------------

class GCNConfig(NamedTuple):
    n_p: int
    h_p: int
    e_p: int
    c_p: int
    exfeature: int
    ncls: int


def prepare_gcn(adj, params, compute_dtype=jnp.bfloat16):
    """One-time setup: pad + cast adj/weights and fold the Linear head into gc2's RHS.

    Hoisted out of the per-call path so the forward never re-pads / re-casts adj.
    """
    n = adj.shape[0]
    nfeat, nhid = params["w1"].shape
    exf = params["w2"].shape[1]
    ncls = params["wl_t"].shape[1]
    assert ncls == 2, "head is nn.Linear(exfeature, 2)"

    n_p = _round_up(n, _LANE)          # lane-dense adj K dim (128, not 8)
    h_p = _round_up(nhid, _LANE)
    e_p = _round_up(exf, _LANE)
    c_p = _round_up(ncls, _LANE)

    adj_p = _pad2(adj.astype(jnp.float32), n_p, n_p).astype(compute_dtype)
    w1_p = _pad2(params["w1"], nfeat, h_p)                         # f32, used by XLA x@W1
    b1_p = _pad2(params["b1"].reshape(1, -1), 1, h_p).astype(jnp.float32)

    # Head fold:  adj @ (h @ [W2 | W2 Wl]) + [b2 | b2 Wl + bl]  ==  [x2 | logits].
    w2l = params["w2"] @ params["wl_t"]                            # (nhid, 2)
    rhs2 = jnp.concatenate([_pad2(params["w2"], h_p, e_p),
                            _pad2(w2l, h_p, c_p)], axis=1).astype(compute_dtype)
    bl2 = params["b2"] @ params["wl_t"] + params["bl"]             # (2,)
    bias2 = jnp.concatenate([_pad2(params["b2"].reshape(1, -1), 1, e_p),
                             _pad2(bl2.reshape(1, -1), 1, c_p)],
                            axis=1).astype(jnp.float32)

    prep = {"adj": adj_p, "w1": w1_p, "b1": b1_p, "rhs2": rhs2, "bias2": bias2}
    return prep, GCNConfig(n_p, h_p, e_p, c_p, exf, ncls)


@partial(jax.jit, static_argnames=("cfg", "training", "force_tiled", "row_tile"))
def gcn_forward(x, prep, *, cfg, training=False, force_tiled=False, row_tile=512):
    """GCN forward on pre-padded tensors (from prepare_gcn).

    Returns (x_exfeature, log_probs) in f32, shapes (n, exfeature) and (n, 2).
    """
    if training:
        # TODO(synk): training-mode dropout (scaled Bernoulli mask via pltpu.prng_*).
        raise NotImplementedError("only eval-mode (training=False) forward is implemented")

    n = x.shape[0]
    cd = prep["adj"].dtype
    itemsize = jnp.dtype(cd).itemsize
    n_p, h_p, ec = cfg.n_p, cfg.h_p, cfg.e_p + cfg.c_p

    # gc1's feature matmul as a plain XLA op: x is only (n, nfeat); padding nfeat to 128
    # for an in-kernel MXU dot would make it ~16x larger than needed.
    s1 = jnp.dot(x.astype(jnp.float32), prep["w1"])                 # (n, h_p) f32
    s1 = jnp.pad(s1, ((0, n_p - n), (0, 0))).astype(cd)             # (n_p, h_p) bf16

    out_dtype = jnp.bfloat16           # lane-dense bf16 stores: half the writeback bytes
    vmem = pl.BlockSpec(memory_space=pltpu.MemorySpace.VMEM)

    fused_bytes = (n_p * n_p * itemsize                  # adj
                   + n_p * h_p * (itemsize + 4)          # s1 + h (f32 temp)
                   + n_p * ec * (4 + 2 * itemsize)       # y f32 + s2 + outputs
                   + h_p * ec * itemsize + ec * 8)

    if not force_tiled and fused_bytes <= _FUSED_VMEM_BUDGET:
        # ---- small-graph plan: adj VMEM-resident, single fused pass over HBM ----------
        x2p, logpp = pl.pallas_call(
            partial(_gcn_fused_kernel, e_p=cfg.e_p),
            out_shape=(jax.ShapeDtypeStruct((n_p, cfg.e_p), out_dtype),
                       jax.ShapeDtypeStruct((n_p, cfg.c_p), out_dtype)),
            in_specs=[vmem] * 5,
            out_specs=(vmem, vmem),
            compiler_params=pltpu.CompilerParams(
                vmem_limit_bytes=_vmem_limit(fused_bytes)),
        )(prep["adj"], s1, prep["b1"], prep["rhs2"], prep["bias2"])
    else:
        # ---- large-graph plan: stream adj twice in row tiles ---------------------------
        # Row axis is "parallel" (shards across both v7x TensorCores); s1 / s2 / biases
        # stay VMEM-resident across grid steps; BlockSpec double-buffers the adj tiles.
        tm = max(_LANE, min(row_tile, n_p))
        tm -= tm % _LANE
        while n_p % tm:
            tm -= _LANE
        n_tiles = n_p // tm

        a_bytes = (2 * tm * n_p * itemsize + n_p * h_p * itemsize
                   + h_p * ec * itemsize + 2 * tm * ec * itemsize
                   + tm * (h_p + ec) * 4)
        s2 = pl.pallas_call(
            _gcn_phase_a_kernel,
            out_shape=jax.ShapeDtypeStruct((n_p, ec), cd),
            grid=(n_tiles,),
            in_specs=[pl.BlockSpec((tm, n_p), lambda i: (i, 0)),      # adj row tile
                      pl.BlockSpec((n_p, h_p), lambda i: (0, 0)),     # s1 (resident)
                      pl.BlockSpec((1, h_p), lambda i: (0, 0)),       # b1
                      pl.BlockSpec((h_p, ec), lambda i: (0, 0))],     # [W2 | W2 Wl]
            out_specs=pl.BlockSpec((tm, ec), lambda i: (i, 0)),
            compiler_params=pltpu.CompilerParams(
                dimension_semantics=("parallel",),
                vmem_limit_bytes=_vmem_limit(a_bytes)),
        )(prep["adj"], s1, prep["b1"], prep["rhs2"])

        b_bytes = (2 * tm * n_p * itemsize + n_p * ec * itemsize
                   + 4 * tm * ec * itemsize + tm * ec * 4)
        x2p, logpp = pl.pallas_call(
            partial(_gcn_phase_b_kernel, e_p=cfg.e_p),
            out_shape=(jax.ShapeDtypeStruct((n_p, cfg.e_p), out_dtype),
                       jax.ShapeDtypeStruct((n_p, cfg.c_p), out_dtype)),
            grid=(n_tiles,),
            in_specs=[pl.BlockSpec((tm, n_p), lambda i: (i, 0)),      # adj row tile
                      pl.BlockSpec((n_p, ec), lambda i: (0, 0)),      # s2 (resident)
                      pl.BlockSpec((1, ec), lambda i: (0, 0))],       # [b2 | b2 Wl + bl]
            out_specs=(pl.BlockSpec((tm, cfg.e_p), lambda i: (i, 0)),
                       pl.BlockSpec((tm, cfg.c_p), lambda i: (i, 0))),
            compiler_params=pltpu.CompilerParams(
                dimension_semantics=("parallel",),
                vmem_limit_bytes=_vmem_limit(b_bytes)),
        )(prep["adj"], s2, prep["bias2"])

    # Padded rows/lanes contain garbage by construction; only the sliced region is valid.
    x2 = x2p[:n, :cfg.exfeature].astype(jnp.float32)
    logp = logpp[:n, :cfg.ncls].astype(jnp.float32)
    return x2, logp


# --------------------------------- driver ------------------------------------

def init_params(key, nfeat, nhid, exfeature):
    k1, k2, k3, k4, k5, k6 = jax.random.split(key, 6)
    scale = 0.1
    return {
        "w1": scale * jax.random.normal(k1, (nfeat, nhid), jnp.float32),
        "b1": scale * jax.random.normal(k2, (nhid,), jnp.float32),
        "w2": scale * jax.random.normal(k3, (nhid, exfeature), jnp.float32),
        "b2": scale * jax.random.normal(k4, (exfeature,), jnp.float32),
        # nn.Linear(exfeature, 2) has weight (2, exfeature); store transposed.
        "wl_t": scale * jax.random.normal(k5, (exfeature, 2), jnp.float32),
        "bl": scale * jax.random.normal(k6, (2,), jnp.float32),
    }


def gcn_reference(x, adj, params):
    h = jnp.maximum(adj @ (x @ params["w1"]) + params["b1"], 0.0)
    x2 = adj @ (h @ params["w2"]) + params["b2"]
    logits = x2 @ params["wl_t"] + params["bl"]
    return x2, jax.nn.log_softmax(logits, axis=1)


if __name__ == "__main__":
    key = jax.random.PRNGKey(0)
    N, nfeat, nhid, exfeature = 256, 8, 32, 16

    kx, ka, kp = jax.random.split(key, 3)
    x = jax.random.normal(kx, (N, nfeat), jnp.float32)

    # Symmetric, row-normalized dense adjacency with self loops.
    a = (jax.random.uniform(ka, (N, N)) > 0.9).astype(jnp.float32)
    a = jnp.maximum(a, a.T) + jnp.eye(N, dtype=jnp.float32)
    adj = a / jnp.sum(a, axis=1, keepdims=True)

    params = init_params(kp, nfeat, nhid, exfeature)

    # One-time setup (pad / bf16-cast / head-fold), hoisted out of the per-call path.
    prep, cfg = prepare_gcn(adj, params)

    x_ref_, lp_ref_ = gcn_reference(x, adj, params)

    # Path 1: small-graph fused single-call plan.
    x_ex, log_probs = gcn_forward(x, prep, cfg=cfg)
    jax.block_until_ready((x_ex, log_probs))
    assert x_ex.shape == (N, exfeature)
    assert log_probs.shape == (N, 2)
    assert jnp.allclose(jnp.sum(jnp.exp(log_probs), axis=1), 1.0, atol=2e-2)
    assert jnp.allclose(x_ex, x_ref_, atol=3e-2, rtol=3e-2), \
        float(jnp.max(jnp.abs(x_ex - x_ref_)))
    assert jnp.allclose(log_probs, lp_ref_, atol=3e-2, rtol=3e-2), \
        float(jnp.max(jnp.abs(log_probs - lp_ref_)))

    # Path 2: large-graph row-tiled two-pass plan, forced here to validate it end-to-end.
    x_ex_t, lp_t = gcn_forward(x, prep, cfg=cfg, force_tiled=True, row_tile=128)
    jax.block_until_ready((x_ex_t, lp_t))
    assert jnp.allclose(x_ex_t, x_ref_, atol=3e-2, rtol=3e-2), \
        float(jnp.max(jnp.abs(x_ex_t - x_ref_)))
    assert jnp.allclose(lp_t, lp_ref_, atol=3e-2, rtol=3e-2), \
        float(jnp.max(jnp.abs(lp_t - lp_ref_)))

    print("KERNEL_OK")
</pallas_src>

<mosaic_0001>
module attributes {stable_mosaic.version = 11 : i64} {
  func.func @_gcn_fused_kernel(%arg0: memref<256x256xbf16, #tpu.memory_space<vmem>>, %arg1: memref<256x128xbf16, #tpu.memory_space<vmem>>, %arg2: memref<1x128xf32, #tpu.memory_space<vmem>>, %arg3: memref<128x256xbf16, #tpu.memory_space<vmem>>, %arg4: memref<1x256xf32, #tpu.memory_space<vmem>>, %arg5: memref<256x128xbf16, #tpu.memory_space<vmem>>, %arg6: memref<256x128xbf16, #tpu.memory_space<vmem>>) attributes {dimension_semantics = [], scalar_prefetch = 0 : i64, scratch_operands = 0 : i64, tpu.core_type = #tpu.core_type<tc>} {
    %c0 = arith.constant 0 : index
    %c0_0 = arith.constant 0 : index
    %0 = vector.load %arg0[%c0, %c0_0] : memref<256x256xbf16, #tpu.memory_space<vmem>>, vector<256x256xbf16>
    %c0_1 = arith.constant 0 : index
    %c0_2 = arith.constant 0 : index
    %1 = vector.load %arg1[%c0_1, %c0_2] : memref<256x128xbf16, #tpu.memory_space<vmem>>, vector<256x128xbf16>
    %cst = arith.constant dense<0.000000e+00> : vector<256x128xf32>
    %2 = tpu.matmul %0, %1, %cst {dimension_numbers = #tpu.dot_dimension_numbers<[1], [0], [0], [1], [0, 0, 1, 1], [], []>} : vector<256x256xbf16>, vector<256x128xbf16>, vector<256x128xf32> -> vector<256x128xf32>
    %c0_3 = arith.constant 0 : index
    %c0_4 = arith.constant 0 : index
    %3 = vector.load %arg2[%c0_3, %c0_4] : memref<1x128xf32, #tpu.memory_space<vmem>>, vector<1x128xf32>
    %4 = vector.broadcast %3 : vector<1x128xf32> to vector<256x128xf32>
    %5 = arith.addf %2, %4 : vector<256x128xf32>
    %cst_5 = arith.constant 0.000000e+00 : f32
    %6 = vector.broadcast %cst_5 : f32 to vector<256x128xf32>
    %7 = arith.maximumf %5, %6 : vector<256x128xf32>
    %8 = arith.truncf %7 : vector<256x128xf32> to vector<256x128xbf16>
    %c0_6 = arith.constant 0 : index
    %c0_7 = arith.constant 0 : index
    %9 = vector.load %arg3[%c0_6, %c0_7] : memref<128x256xbf16, #tpu.memory_space<vmem>>, vector<128x256xbf16>
    %cst_8 = arith.constant dense<0.000000e+00> : vector<256x256xf32>
    %10 = tpu.matmul %8, %9, %cst_8 {dimension_numbers = #tpu.dot_dimension_numbers<[1], [0], [0], [1], [0, 0, 1, 1], [], []>} : vector<256x128xbf16>, vector<128x256xbf16>, vector<256x256xf32> -> vector<256x256xf32>
    %11 = arith.truncf %10 : vector<256x256xf32> to vector<256x256xbf16>
    %cst_9 = arith.constant dense<0.000000e+00> : vector<256x256xf32>
    %12 = tpu.matmul %0, %11, %cst_9 {dimension_numbers = #tpu.dot_dimension_numbers<[1], [0], [0], [1], [0, 0, 1, 1], [], []>} : vector<256x256xbf16>, vector<256x256xbf16>, vector<256x256xf32> -> vector<256x256xf32>
    %c0_10 = arith.constant 0 : index
    %c0_11 = arith.constant 0 : index
    %13 = vector.load %arg4[%c0_10, %c0_11] : memref<1x256xf32, #tpu.memory_space<vmem>>, vector<1x256xf32>
    %14 = vector.broadcast %13 : vector<1x256xf32> to vector<256x256xf32>
    %15 = arith.addf %12, %14 : vector<256x256xf32>
    %16 = vector.extract_strided_slice %15 {offsets = [0, 0], sizes = [256, 128], strides = [1, 1]} : vector<256x256xf32> to vector<256x128xf32>
    %17 = arith.truncf %16 : vector<256x128xf32> to vector<256x128xbf16>
    %c0_12 = arith.constant 0 : index
    %c0_13 = arith.constant 0 : index
    %18 = vector.load %arg5[%c0_12, %c0_13] : memref<256x128xbf16, #tpu.memory_space<vmem>>, vector<256x128xbf16>
    tpu.vector_store %arg5[%c0_12, %c0_13], %17 {strides = array<i32>} : memref<256x128xbf16, #tpu.memory_space<vmem>>, vector<256x128xbf16>,
    %19 = vector.extract_strided_slice %15 {offsets = [0, 128], sizes = [256, 128], strides = [1, 1]} : vector<256x256xf32> to vector<256x128xf32>
    %20 = vector.extract_strided_slice %19 {offsets = [0, 0], sizes = [256, 1], strides = [1, 1]} : vector<256x128xf32> to vector<256x1xf32>
    %21 = vector.extract_strided_slice %19 {offsets = [0, 1], sizes = [256, 1], strides = [1, 1]} : vector<256x128xf32> to vector<256x1xf32>
    %22 = arith.maximumf %20, %21 : vector<256x1xf32>
    %23 = arith.subf %20, %22 : vector<256x1xf32>
    %24 = math.exp %23 : vector<256x1xf32>
    %25 = arith.subf %21, %22 : vector<256x1xf32>
    %26 = math.exp %25 : vector<256x1xf32>
    %27 = arith.addf %24, %26 : vector<256x1xf32>
    %28 = math.log %27 : vector<256x1xf32>
    %29 = arith.addf %22, %28 : vector<256x1xf32>
    %30 = vector.broadcast %29 : vector<256x1xf32> to vector<256x128xf32>
    %31 = arith.subf %19, %30 : vector<256x128xf32>
    %32 = arith.truncf %31 : vector<256x128xf32> to vector<256x128xbf16>
    %c0_14 = arith.constant 0 : index
    %c0_15 = arith.constant 0 : index
    %33 = vector.load %arg6[%c0_14, %c0_15] : memref<256x128xbf16, #tpu.memory_space<vmem>>, vector<256x128xbf16>
    tpu.vector_store %arg6[%c0_14, %c0_15], %32 {strides = array<i32>} : memref<256x128xbf16, #tpu.memory_space<vmem>>, vector<256x128xbf16>,
    return
  }
}

</mosaic_0001>

<bundles_post_ra>
// kernel: gcn_forward.1
= control target key start
LH: loop header
LB: loop body
LE: loop exit
PB: predicated region body
PF: predicated region fallthrough
CT: control target
= control target key end

     0   :  { %12 = vsyncpa [#allocation3], 0  ;;  %s3060_s24 = smov [#allocation2]   ;;  %s3061_s26 = smov 128   ;;  %s4209_s0 = inlined_call_operand.hbm [shape: bf16[256,256], index: 0, kind: input, shape index: {}]   ;;  %s4210_s1 = inlined_call_operand.vmem [shape: bf16[256,128], index: 1, kind: input, shape index: {}]   ;;  %s4211_s2 = inlined_call_operand.vmem [shape: f32[1,128], index: 2, kind: input, shape index: {}]   ;;  %s4212_s3 = inlined_call_operand.vmem [shape: bf16[128,256], index: 3, kind: input, shape index: {}]   ;;  %s4213_s4 = inlined_call_operand.vmem [shape: f32[1,256], index: 4, kind: input, shape index: {}]   ;;  %s4214_s5 = inlined_call_operand.vmem [shape: bf16[256,128], index: 5, kind: output, shape index: {0}]   ;;  %s4215_s6 = inlined_call_operand.vmem [shape: bf16[256,128], index: 6, kind: output, shape index: {1}]  }
   0x1   :  { %s17_s23 = sshll.u32 %s4209_s0, 4  ;;  %s19_s25 = sshll.u32 %s3060_s24, 4  ;;  %s18_s23 = int_to_ptr.hbm [resolvable:$true] %s17_s23  ;;  %s20_s25 = int_to_ptr.vmem [resolvable:$true] %s19_s25 }
   0x2   :  { %s3062_s27 = smov 8  }
   0x3   :  { %25 = dma.hbm_to_vmem [thread:$0]  %s18_s23, 4096, %s20_s25, [#allocation3], %s3061_s26, %s3061_s26, %s3062_s27  }
   0x4   :  { %3058 = dma.done.wait [#allocation3], 4096  }
   0x5   :  { %3059 = vsyncadd [#allocation3], 4294963200  ;;  %v2616_v0 = vld [vmem:[%s4210_s1 + $0x38] sm:$0xff]  ;;  %v2615_v2 = vld [vmem:[%s4210_s1 + $0x30] sm:$0xff]  ;;  %s3063_s23 = smov 127   ;;  %s3064_s24 = smov 1  }
   0x6   :  { %v2624_v1 = vld [vmem:[%s4210_s1 + $0x78] sm:$0xff]  ;;  %362 = vmatpush.bf16.msra.mxu0 %v2616_v0  ;;  %v2623_v3 = vld [vmem:[%s4210_s1 + $0x70] sm:$0xff]  ;;  %v2614_v4 = vld [vmem:[%s4210_s1 + $0x28] sm:$0xff] }
   0x7   :  { %451 = vmatpush.bf16.msra.mxu1 %v2624_v1  ;;  %v2622_v5 = vld [vmem:[%s4210_s1 + $0x68] sm:$0xff]  ;;  %v2613_v6 = vld [vmem:[%s4210_s1 + $0x20] sm:$0xff]  ;;  %v2612_v8 = vld [vmem:[%s4210_s1 + $0x18] sm:$0xff] }
   0x8   :  { %v2621_v7 = vld [vmem:[%s4210_s1 + $0x60] sm:$0xff]  ;;  %v2620_v9 = vld [vmem:[%s4210_s1 + $0x58] sm:$0xff]  ;;  %v2611_v10 = vld [vmem:[%s4210_s1 + $0x10] sm:$0xff] }
   0x9   :  { %v2619_v11 = vld [vmem:[%s4210_s1 + $0x50] sm:$0xff]  ;;  %v2610_v12 = vld [vmem:[%s4210_s1 + $0x8] sm:$0xff]  ;;  %v2609_v14 = vld [vmem:[%s4210_s1] sm:$0xff] }
   0xa   :  { %363 = vmatpush.bf16.msra.mxu0 %v2615_v2  ;;  %v2618_v13 = vld [vmem:[%s4210_s1 + $0x48] sm:$0xff]  ;;  %v2617_v15 = vld [vmem:[%s4210_s1 + $0x40] sm:$0xff]  ;;  %v2331_v22 = vld [vmem:[#allocation2 + $0x10] sm:$0xf] }
   0xb   :  { %452 = vmatpush.bf16.msra.mxu1 %v2623_v3  ;;  %v2323_v16 = vld [vmem:[#allocation2] sm:$0xf]  ;;  %v2578_v17 = vld [vmem:[#allocation2 + $0x4] sm:$0xf0]  ;;  %v2577_v18 = vld [vmem:[#allocation2 + $0x4] sm:$0xf] }
   0xc   :  { %v2325_v19 = vld [vmem:[#allocation2 + $0x8] sm:$0xf0]  ;;  %v3152_v20 = vor.u32 %v2578_v17, %v2323_v16  ;;  %v2580_v23 = vld [vmem:[#allocation2 + $0x14] sm:$0xf0]  ;;  %v2579_v24 = vld [vmem:[#allocation2 + $0x14] sm:$0xf] }
   0xd   :  { %v3154_v21 = vor.u32 %v2577_v18, %v2325_v19  ;;  %v2333_v25 = vld [vmem:[#allocation2 + $0x18] sm:$0xf0]  ;;  %v3158_v26 = vor.u32 %v2580_v23, %v2331_v22  ;;  %v2339_v28 = vld [vmem:[#allocation2 + $0x20] sm:$0xf]  ;;  %v2582_v29 = vld [vmem:[#allocation2 + $0x24] sm:$0xf0] }
   0xe   :  { %364 = vmatpush.bf16.msra.mxu0 %v2614_v4  ;;  %v3160_v27 = vor.u32 %v2579_v24, %v2333_v25  ;;  %v2581_v30 = vld [vmem:[#allocation2 + $0x24] sm:$0xf]  ;;  %v2341_v31 = vld [vmem:[#allocation2 + $0x28] sm:$0xf0]  ;;  %v3164_v32 = vor.u32 %v2582_v29, %v2339_v28  ;;  %v2347_v34 = vld [vmem:[#allocation2 + $0x30] sm:$0xf] }
   0xf   :  { %453 = vmatpush.bf16.msra.mxu1 %v2622_v5  ;;  %v3166_v33 = vor.u32 %v2581_v30, %v2341_v31  ;;  %v2584_v35 = vld [vmem:[#allocation2 + $0x34] sm:$0xf0]  ;;  %v2583_v36 = vld [vmem:[#allocation2 + $0x34] sm:$0xf]  ;;  %v2349_v37 = vld [vmem:[#allocation2 + $0x38] sm:$0xf0] }
  0x10   :  { %v3170_v38 = vor.u32 %v2584_v35, %v2347_v34  ;;  %v3172_v39 = vor.u32 %v2583_v36, %v2349_v37  ;;  %v2355_v40 = vld [vmem:[#allocation2 + $0x40] sm:$0xf]  ;;  %v2586_v41 = vld [vmem:[#allocation2 + $0x44] sm:$0xf0]  ;;  %v2585_v42 = vld [vmem:[#allocation2 + $0x44] sm:$0xf] }
  0x11   :  { %v2357_v43 = vld [vmem:[#allocation2 + $0x48] sm:$0xf0]  ;;  %v3176_v44 = vor.u32 %v2586_v41, %v2355_v40  ;;  %v2571_v46 = vld [vmem:[%s4212_s3 + $0x70] sm:$0xf]  ;;  %v2640_v47 = vld [vmem:[%s4212_s3 + $0x74] sm:$0xf0] }
  0x12   :  { %365 = vmatpush.bf16.msra.mxu0 %v2613_v6  ;;  %v3178_v45 = vor.u32 %v2585_v42, %v2357_v43  ;;  %v2639_v48 = vld [vmem:[%s4212_s3 + $0x74] sm:$0xf]  ;;  %v2572_v49 = vor.u32 %v2640_v47, %v2571_v46  ;;  %v2573_v50 = vld [vmem:[%s4212_s3 + $0x78] sm:$0xf0]  ;;  %v2363_v52 = vld [vmem:[#allocation2 + $0x50] sm:$0xf] }
  0x13   :  { %454 = vmatpush.bf16.msra.mxu1 %v2621_v7  ;;  %v2576_v51 = vor.u32 %v2639_v48, %v2573_v50  ;;  %v2588_v53 = vld [vmem:[#allocation2 + $0x54] sm:$0xf0]  ;;  %v2587_v54 = vld [vmem:[#allocation2 + $0x54] sm:$0xf]  ;;  %v2365_v55 = vld [vmem:[#allocation2 + $0x58] sm:$0xf0] }
  0x14   :  { %684 = vmatpush.bf16.msra.mxu2 %v2572_v49  ;;  %v3194_v56 = vor.u32 %v2588_v53, %v2363_v52  ;;  %v3196_v57 = vor.u32 %v2587_v54, %v2365_v55  ;;  %v2563_v58 = vld [vmem:[%s4212_s3 + $0x60] sm:$0xf]  ;;  %v2638_v59 = vld [vmem:[%s4212_s3 + $0x64] sm:$0xf0]  ;;  %v2637_v60 = vld [vmem:[%s4212_s3 + $0x64] sm:$0xf] }
  0x15   :  { %773 = vmatpush.bf16.msra.mxu3 %v2576_v51  ;;  %v2564_v61 = vor.u32 %v2638_v59, %v2563_v58  ;;  %v2565_v62 = vld [vmem:[%s4212_s3 + $0x68] sm:$0xf0]  ;;  %v2555_v63 = vld [vmem:[%s4212_s3 + $0x50] sm:$0xf]  ;;  %v2636_v0 = vld [vmem:[%s4212_s3 + $0x54] sm:$0xf0] }
  0x16   :  { %366 = vmatpush.bf16.msra.mxu0 %v2612_v8  ;;  %v2568_v1 = vor.u32 %v2637_v60, %v2565_v62  ;;  %v2635_v2 = vld [vmem:[%s4212_s3 + $0x54] sm:$0xf]  ;;  %v2557_v3 = vld [vmem:[%s4212_s3 + $0x58] sm:$0xf0]  ;;  %v2556_v4 = vor.u32 %v2636_v0, %v2555_v63  ;;  %v2547_v6 = vld [vmem:[%s4212_s3 + $0x40] sm:$0xf] }
  0x17   :  { %455 = vmatpush.bf16.msra.mxu1 %v2620_v9  ;;  %v2560_v5 = vor.u32 %v2635_v2, %v2557_v3  ;;  %v2634_v7 = vld [vmem:[%s4212_s3 + $0x44] sm:$0xf0]  ;;  %v2633_v8 = vld [vmem:[%s4212_s3 + $0x44] sm:$0xf]  ;;  %v2549_v9 = vld [vmem:[%s4212_s3 + $0x48] sm:$0xf0] }
  0x18   :  { %685 = vmatpush.bf16.msra.mxu2 %v2564_v61  ;;  %v2539_v18 = vld [vmem:[%s4212_s3 + $0x30] sm:$0xf]  ;;  %v2632_v19 = vld [vmem:[%s4212_s3 + $0x34] sm:$0xf0]  ;;  %v2631_v22 = vld [vmem:[%s4212_s3 + $0x34] sm:$0xf] }
  0x19   :  { %774 = vmatpush.bf16.msra.mxu3 %v2568_v1  ;;  %v2540_v23 = vor.u32 %v2632_v19, %v2539_v18  ;;  %v2541_v24 = vld [vmem:[%s4212_s3 + $0x38] sm:$0xf0]  ;;  %v2531_v28 = vld [vmem:[%s4212_s3 + $0x20] sm:$0xf]  ;;  %v2630_v29 = vld [vmem:[%s4212_s3 + $0x24] sm:$0xf0] }
  0x1a   :  { %367 = vmatpush.bf16.msra.mxu0 %v2611_v10  ;;  %v2548_v10 = vor.u32 %v2634_v7, %v2547_v6  ;;  %v2544_v25 = vor.u32 %v2631_v22, %v2541_v24  ;;  %v2629_v30 = vld [vmem:[%s4212_s3 + $0x24] sm:$0xf]  ;;  %v2532_v31 = vor.u32 %v2630_v29, %v2531_v28  ;;  %v2533_v34 = vld [vmem:[%s4212_s3 + $0x28] sm:$0xf0]  ;;  %v2523_v36 = vld [vmem:[%s4212_s3 + $0x10] sm:$0xf] }
  0x1b   :  { %456 = vmatpush.bf16.msra.mxu1 %v2619_v11  ;;  %v2371_v11 = vld [vmem:[#allocation2 + $0x60] sm:$0xf]  ;;  %v2536_v35 = vor.u32 %v2629_v30, %v2533_v34  ;;  %v2628_v37 = vld [vmem:[%s4212_s3 + $0x14] sm:$0xf0]  ;;  %v2627_v40 = vld [vmem:[%s4212_s3 + $0x14] sm:$0xf] }
  0x1c   :  { %686 = vmatpush.bf16.msra.mxu2 %v2556_v4  ;;  %v2524_v41 = vor.u32 %v2628_v37, %v2523_v36  ;;  %v2525_v42 = vld [vmem:[%s4212_s3 + $0x18] sm:$0xf0]  ;;  %v2379_v46 = vld [vmem:[#allocation2 + $0x70] sm:$0xf]  ;;  %v2592_v47 = vld [vmem:[#allocation2 + $0x74] sm:$0xf0] }
  0x1d   :  { %775 = vmatpush.bf16.msra.mxu3 %v2560_v5  ;;  %v2528_v43 = vor.u32 %v2627_v40, %v2525_v42  ;;  %v2515_v48 = vld [vmem:[%s4212_s3] sm:$0xf]  ;;  %v2626_v49 = vld [vmem:[%s4212_s3 + $0x4] sm:$0xf0]  ;;  %v2625_v50 = vld [vmem:[%s4212_s3 + $0x4] sm:$0xf]  ;;  %v3290_v58 = vor.u32 %v2592_v47, %v2379_v46 }
  0x1e   :  { %368 = vmatpush.bf16.msra.mxu0 %v2610_v12  ;;  %v2552_v12 = vor.u32 %v2633_v8, %v2549_v9  ;;  %v2591_v51 = vld [vmem:[#allocation2 + $0x74] sm:$0xf]  ;;  %v2381_v52 = vld [vmem:[#allocation2 + $0x78] sm:$0xf0]  ;;  %v2516_v53 = vor.u32 %v2626_v49, %v2515_v48  ;;  %v2517_v54 = vld [vmem:[%s4212_s3 + $0x8] sm:$0xf0] }
  0x1f   :  { %457 = vmatpush.bf16.msra.mxu1 %v2618_v13  ;;  %v2590_v13 = vld [vmem:[#allocation2 + $0x64] sm:$0xf0]  ;;  %v2520_v55 = vor.u32 %v2625_v50, %v2517_v54  ;;  %v3292_v59 = vor.u32 %v2591_v51, %v2381_v52  ;;  %v2387_v60 = vld [vmem:[#allocation2 + $0x80] sm:$0xf]  ;;  %v2593_v62 = vld [vmem:[#allocation2 + $0x84] sm:$0xf] }
  0x20   :  { %687 = vmatpush.bf16.msra.mxu2 %v2548_v10  ;;  %v3236_v16 = vor.u32 %v2590_v13, %v2371_v11  ;;  %v2594_v61 = vld [vmem:[#allocation2 + $0x84] sm:$0xf0]  ;;  %v2389_v63 = vld [vmem:[#allocation2 + $0x88] sm:$0xf0]  ;;  %v3303_v4 = vld [vmem:[%s4211_s2] ss:$0 sm:$0xff] }
  0x21   :  { %776 = vmatpush.bf16.msra.mxu3 %v2552_v12  ;;  %4283 = vst [vmem:[#allocation6_spill] sm:$0xff] %v3292_v59  ;;  %v3296_v0 = vor.u32 %v2594_v61, %v2387_v60  ;;  %v3298_v1 = vor.u32 %v2593_v62, %v2389_v63  ;;  %v2395_v11 = vld [vmem:[#allocation2 + $0x90] sm:$0xf]  ;;  %v2596_v12 = vld [vmem:[#allocation2 + $0x94] sm:$0xf0] }
  0x22   :  { %369 = vmatpush.bf16.msra.mxu0 %v2609_v14  ;;  %v2589_v14 = vld [vmem:[#allocation2 + $0x64] sm:$0xf]  ;;  %v2595_v13 = vld [vmem:[#allocation2 + $0x94] sm:$0xf]  ;;  %v3309_v22 = vor.u32 %v2596_v12, %v2395_v11  ;;  %v2403_v36 = vld [vmem:[#allocation2 + $0xa0] sm:$0xf] }
  0x23   :  { %458 = vmatpush.bf16.msra.mxu1 %v2617_v15  ;;  %v2373_v15 = vld [vmem:[#allocation2 + $0x68] sm:$0xf0]  ;;  %4284 = vst [vmem:[#allocation7_spill] sm:$0xff] %v3298_v1  ;;  %v2598_v37 = vld [vmem:[#allocation2 + $0xa4] sm:$0xf0] }
  0x24   :  { %v3238_v17 = vor.u32 %v2589_v14, %v2373_v15  ;;  %688 = vmatpush.bf16.msra.mxu2 %v2540_v23  ;;  %v2397_v14 = vld [vmem:[#allocation2 + $0x98] sm:$0xf0]  ;;  %v2597_v40 = vld [vmem:[#allocation2 + $0xa4] sm:$0xf]  ;;  %v3317_v47 = vor.u32 %v2598_v37, %v2403_v36  ;;  %v2411_v61 = vld [vmem:[#allocation2 + $0xb0] sm:$0xf] }
  0x25   :  { %370 = vmatmul.bf16.vlgmr.msra.gmra.mxu0 %v3152_v20  ;;  %777 = vmatpush.bf16.msra.mxu3 %v2544_v25  ;;  %v3311_v23 = vor.u32 %v2595_v13, %v2397_v14  ;;  %v2600_v62 = vld [vmem:[#allocation2 + $0xb4] sm:$0xf0]  ;;  %v2599_v63 = vld [vmem:[#allocation2 + $0xb4] sm:$0xf] }
  0x26   :  { %459 = vmatmul.bf16.vlgmr.msra.gmra.mxu1 %v3154_v21  ;;  %4282 = vst [vmem:[#allocation5_spill] sm:$0xff] %v3238_v17 }
  0x27   :  { %4285 = vst [vmem:[#allocation8_spill] sm:$0xff] %v3311_v23 }
  0x28   :  { %689 = vmatpush.bf16.msra.mxu2 %v2532_v31 }
  0x29   :  { %778 = vmatpush.bf16.msra.mxu3 %v2536_v35 }
  0x2c   :  { %690 = vmatpush.bf16.msra.mxu2 %v2524_v41  ;;  %v2405_v41 = vld [vmem:[#allocation2 + $0xa8] sm:$0xf0] }
  0x2d   :  { %779 = vmatpush.bf16.msra.mxu3 %v2528_v43  ;;  %v3319_v48 = vor.u32 %v2597_v40, %v2405_v41 }
  0x2f   :  { %4286 = vst [vmem:[#allocation9_spill] sm:$0xff] %v3319_v48 }
  0x30   :  { %691 = vmatpush.bf16.msra.mxu2 %v2516_v53 }
  0x31   :  { %780 = vmatpush.bf16.msra.mxu3 %v2520_v55 }
  0x35   :  { %375 = vmatmul.bf16.gmra.mxu0 %v3158_v26 }
  0x36   :  { %464 = vmatmul.bf16.gmra.mxu1 %v3160_v27 }
  0x45   :  { %380 = vmatmul.bf16.gmra.mxu0 %v3164_v32 }
  0x46   :  { %469 = vmatmul.bf16.gmra.mxu1 %v3166_v33 }
  0x55   :  { %385 = vmatmul.bf16.gmra.mxu0 %v3170_v38 }
  0x56   :  { %474 = vmatmul.bf16.gmra.mxu1 %v3172_v39 }
  0x65   :  { %390 = vmatmul.bf16.gmra.mxu0 %v3176_v44 }
  0x66   :  { %479 = vmatmul.bf16.gmra.mxu1 %v3178_v45 }
  0x75   :  { %395 = vmatmul.bf16.gmra.mxu0 %v3194_v56 }
  0x76   :  { %484 = vmatmul.bf16.gmra.mxu1 %v3196_v57 }
  0x85   :  { %400 = vmatmul.bf16.gmra.mxu0 %v3236_v16 }
  0x86   :  { %489 = vmatmul.bf16.gmra.mxu1 %v3238_v17 }
  0x95   :  { %405 = vmatmul.bf16.gmra.mxu0 %v3290_v58 }
  0x96   :  { %494 = vmatmul.bf16.gmra.mxu1 %v3292_v59 }
  0xa2   :  { %v371_v2 = vpop.f32.mrf.mxu0 }
  0xa3   :  { %v460_v3 = vpop.f32.mrf.mxu1  ;;  %v372_v5 = vadd.f32 %v3303_v4, %v371_v2  ;;  %v2413_v2 = vld [vmem:[#allocation2 + $0xb8] sm:$0xf0] }
  0xa5   :  { %410 = vmatmul.bf16.gmra.mxu0 %v3296_v0  ;;  %v461_v8 = vadd.f32 %v460_v3, %v372_v5 }
  0xa6   :  { %499 = vmatmul.bf16.gmra.mxu1 %v3298_v1 }
  0xa7   :  { %v540_v15 = vmax.f32 %v461_v8, 0.0  ;;  %v3327_v8 = vor.u32 %v2599_v63, %v2413_v2 }
  0xa9   :  { %4287 = vst [vmem:[#allocation10_spill] sm:$0xff] %v3327_v8 }
  0xaa   :  { %v373_v6 = vpop.f32.mrf.mxu0 }
  0xab   :  { %v462_v7 = vpop.f32.mrf.mxu1  ;;  %v374_v9 = vadd.f32 %v3303_v4, %v373_v6 }
  0xad   :  { %v463_v10 = vadd.f32 %v462_v7, %v374_v9  ;;  %v3325_v7 = vor.u32 %v2600_v62, %v2411_v61 }
  0xaf   :  { %v541_v18 = vmax.f32 %v463_v10, 0.0 }
  0xb1   :  { %v572_v19 = vpack.c.bf16 %v541_v18, %v540_v15 }
  0xb2   :  { %v376_v24 = vpop.f32.mrf.mxu0 }
  0xb3   :  { %v465_v25 = vpop.f32.mrf.mxu1  ;;  %692 = vmatmul.bf16.vlgmr.msra.gmra.mxu2 %v572_v19  ;;  %781 = vmatmul.bf16.vlgmr.msra.gmra.mxu3 %v572_v19  ;;  %v377_v28 = vadd.f32 %v3303_v4, %v376_v24  ;;  %v2419_v19 = vld [vmem:[#allocation2 + $0xc0] sm:$0xf]  ;;  %v2602_v24 = vld [vmem:[#allocation2 + $0xc4] sm:$0xf0] }
  0xb5   :  { %415 = vmatmul.bf16.gmra.mxu0 %v3309_v22  ;;  %v466_v31 = vadd.f32 %v465_v25, %v377_v28  ;;  %v2601_v25 = vld [vmem:[#allocation2 + $0xc4] sm:$0xf]  ;;  %v2421_v28 = vld [vmem:[#allocation2 + $0xc8] sm:$0xf0] }
  0xb6   :  { %504 = vmatmul.bf16.gmra.mxu1 %v3311_v23 }
  0xb7   :  { %v542_v42 = vmax.f32 %v466_v31, 0.0 }
  0xba   :  { %v378_v29 = vpop.f32.mrf.mxu0 }
  0xbb   :  { %v467_v30 = vpop.f32.mrf.mxu1  ;;  %v379_v34 = vadd.f32 %v3303_v4, %v378_v29 }
  0xbd   :  { %v468_v35 = vadd.f32 %v467_v30, %v379_v34  ;;  %v3333_v34 = vor.u32 %v2602_v24, %v2419_v19 }
  0xbf   :  { %v543_v43 = vmax.f32 %v468_v35, 0.0  ;;  %4288 = vst [vmem:[#allocation11_spill] sm:$0xff] %v3333_v34  ;;  %v3335_v35 = vor.u32 %v2601_v25, %v2421_v28 }
  0xc1   :  { %v573_v46 = vpack.c.bf16 %v543_v43, %v542_v42  ;;  %4289 = vst [vmem:[#allocation12_spill] sm:$0xff] %v3335_v35 }
  0xc2   :  { %v381_v49 = vpop.f32.mrf.mxu0 }
  0xc3   :  { %v470_v50 = vpop.f32.mrf.mxu1  ;;  %697 = vmatmul.bf16.gmra.mxu2 %v573_v46  ;;  %786 = vmatmul.bf16.gmra.mxu3 %v573_v46  ;;  %v382_v51 = vadd.f32 %v3303_v4, %v381_v49 }
  0xc5   :  { %420 = vmatmul.bf16.gmra.mxu0 %v3317_v47  ;;  %v471_v54 = vadd.f32 %v470_v50, %v382_v51  ;;  %v2427_v50 = vld [vmem:[#allocation2 + $0xd0] sm:$0xf]  ;;  %v2604_v51 = vld [vmem:[#allocation2 + $0xd4] sm:$0xf0] }
  0xc6   :  { %509 = vmatmul.bf16.gmra.mxu1 %v3319_v48  ;;  %v3341_v61 = vor.u32 %v2604_v51, %v2427_v50  ;;  %v2445_v50 = vld [vmem:[#allocation2 + $0xf8] sm:$0xf0] }
  0xc7   :  { %v544_v3 = vmax.f32 %v471_v54, 0.0 }
  0xc8   :  { %4290 = vst [vmem:[#allocation13_spill] sm:$0xff] %v3341_v61 }
  0xca   :  { %v383_v52 = vpop.f32.mrf.mxu0 }
  0xcb   :  { %v472_v53 = vpop.f32.mrf.mxu1  ;;  %v384_v55 = vadd.f32 %v3303_v4, %v383_v52  ;;  %v2603_v52 = vld [vmem:[#allocation2 + $0xd4] sm:$0xf] }
  0xcd   :  { %v473_v60 = vadd.f32 %v472_v53, %v384_v55  ;;  %v2429_v53 = vld [vmem:[#allocation2 + $0xd8] sm:$0xf0] }
  0xce   :  { %v3343_v62 = vor.u32 %v2603_v52, %v2429_v53 }
  0xcf   :  { %v545_v5 = vmax.f32 %v473_v60, 0.0 }
  0xd0   :  { %4291 = vst [vmem:[#allocation14_spill] sm:$0xff] %v3343_v62 }
  0xd1   :  { %v574_v6 = vpack.c.bf16 %v545_v5, %v544_v3 }
  0xd2   :  { %v386_v9 = vpop.f32.mrf.mxu0 }
  0xd3   :  { %v475_v10 = vpop.f32.mrf.mxu1  ;;  %702 = vmatmul.bf16.gmra.mxu2 %v574_v6  ;;  %791 = vmatmul.bf16.gmra.mxu3 %v574_v6  ;;  %v387_v11 = vadd.f32 %v3303_v4, %v386_v9 }
  0xd5   :  { %425 = vmatmul.bf16.gmra.mxu0 %v3325_v7  ;;  %v476_v14 = vadd.f32 %v475_v10, %v387_v11 }
  0xd6   :  { %514 = vmatmul.bf16.gmra.mxu1 %v3327_v8 }
  0xd7   :  { %v546_v29 = vmax.f32 %v476_v14, 0.0  ;;  %v2605_v14 = vld [vmem:[#allocation2 + $0xe4] sm:$0xf] }
  0xda   :  { %v388_v12 = vpop.f32.mrf.mxu0 }
  0xdb   :  { %v477_v13 = vpop.f32.mrf.mxu1  ;;  %v389_v15 = vadd.f32 %v3303_v4, %v388_v12  ;;  %v2435_v12 = vld [vmem:[#allocation2 + $0xe0] sm:$0xf] }
  0xdd   :  { %v478_v18 = vadd.f32 %v477_v13, %v389_v15  ;;  %v2606_v13 = vld [vmem:[#allocation2 + $0xe4] sm:$0xf0]  ;;  %v2437_v15 = vld [vmem:[#allocation2 + $0xe8] sm:$0xf0] }
  0xde   :  { %v3349_v25 = vor.u32 %v2606_v13, %v2435_v12  ;;  %v3351_v28 = vor.u32 %v2605_v14, %v2437_v15 }
  0xdf   :  { %v547_v30 = vmax.f32 %v478_v18, 0.0 }
  0xe0   :  { %4292 = vst [vmem:[#allocation15_spill] sm:$0xff] %v3349_v25 }
  0xe1   :  { %v575_v31 = vpack.c.bf16 %v547_v30, %v546_v29  ;;  %4293 = vst [vmem:[#allocation16_spill] sm:$0xff] %v3351_v28 }
  0xe2   :  { %v391_v36 = vpop.f32.mrf.mxu0 }
  0xe3   :  { %v480_v37 = vpop.f32.mrf.mxu1  ;;  %707 = vmatmul.bf16.gmra.mxu2 %v575_v31  ;;  %796 = vmatmul.bf16.gmra.mxu3 %v575_v31  ;;  %v392_v40 = vadd.f32 %v3303_v4, %v391_v36 }
  0xe5   :  { %430 = vmatmul.bf16.gmra.mxu0 %v3333_v34  ;;  %v481_v43 = vadd.f32 %v480_v37, %v392_v40 }
  0xe6   :  { %519 = vmatmul.bf16.gmra.mxu1 %v3335_v35 }
  0xe7   :  { %v548_v54 = vmax.f32 %v481_v43, 0.0  ;;  %v2443_v43 = vld [vmem:[#allocation2 + $0xf0] sm:$0xf] }
  0xea   :  { %v393_v41 = vpop.f32.mrf.mxu0 }
  0xeb   :  { %v482_v42 = vpop.f32.mrf.mxu1  ;;  %v394_v46 = vadd.f32 %v3303_v4, %v393_v41 }
  0xed   :  { %v483_v49 = vadd.f32 %v482_v42, %v394_v46  ;;  %v2608_v46 = vld [vmem:[#allocation2 + $0xf4] sm:$0xf0] }
  0xef   :  { %v549_v55 = vmax.f32 %v483_v49, 0.0  ;;  %v2607_v49 = vld [vmem:[#allocation2 + $0xf4] sm:$0xf] }
  0xf1   :  { %v576_v60 = vpack.c.bf16 %v549_v55, %v548_v54  ;;  %v3357_v54 = vor.u32 %v2608_v46, %v2443_v43  ;;  %v3359_v55 = vor.u32 %v2607_v49, %v2445_v50 }
  0xf2   :  { %v396_v63 = vpop.f32.mrf.mxu0 }
  0xf3   :  { %v485_v2 = vpop.f32.mrf.mxu1  ;;  %712 = vmatmul.bf16.gmra.mxu2 %v576_v60  ;;  %801 = vmatmul.bf16.gmra.mxu3 %v576_v60  ;;  %v397_v3 = vadd.f32 %v3303_v4, %v396_v63  ;;  %4294 = vst [vmem:[#allocation17_spill] sm:$0xff] %v3357_v54 }
  0xf4   :  { %4295 = vst [vmem:[#allocation18_spill] sm:$0xff] %v3359_v55 }
  0xf5   :  { %435 = vmatmul.bf16.gmra.mxu0 %v3341_v61  ;;  %v486_v9 = vadd.f32 %v485_v2, %v397_v3 }
  0xf6   :  { %524 = vmatmul.bf16.gmra.mxu1 %v3343_v62 }
  0xf7   :  { %v550_v18 = vmax.f32 %v486_v9, 0.0 }
  0xfa   :  { %v398_v5 = vpop.f32.mrf.mxu0 }
  0xfb   :  { %v487_v6 = vpop.f32.mrf.mxu1  ;;  %v399_v10 = vadd.f32 %v3303_v4, %v398_v5 }
  0xfd   :  { %v488_v11 = vadd.f32 %v487_v6, %v399_v10 }
  0xff   :  { %v551_v19 = vmax.f32 %v488_v11, 0.0 }
 0x101   :  { %v577_v24 = vpack.c.bf16 %v551_v19, %v550_v18 }
 0x102   :  { %v401_v29 = vpop.f32.mrf.mxu0 }
 0x103   :  { %v490_v30 = vpop.f32.mrf.mxu1  ;;  %717 = vmatmul.bf16.gmra.mxu2 %v577_v24  ;;  %806 = vmatmul.bf16.gmra.mxu3 %v577_v24  ;;  %v402_v31 = vadd.f32 %v3303_v4, %v401_v29 }
 0x105   :  { %440 = vmatmul.bf16.gmra.mxu0 %v3349_v25  ;;  %v491_v40 = vadd.f32 %v490_v30, %v402_v31 }
 0x106   :  { %529 = vmatmul.bf16.gmra.mxu1 %v3351_v28 }
 0x107   :  { %v552_v51 = vmax.f32 %v491_v40, 0.0 }
 0x10a   :  { %v403_v36 = vpop.f32.mrf.mxu0 }
 0x10b   :  { %v492_v37 = vpop.f32.mrf.mxu1  ;;  %v404_v41 = vadd.f32 %v3303_v4, %v403_v36 }
 0x10d   :  { %v493_v42 = vadd.f32 %v492_v37, %v404_v41 }
 0x10f   :  { %v553_v52 = vmax.f32 %v493_v42, 0.0 }
 0x111   :  { %v578_v53 = vpack.c.bf16 %v553_v52, %v552_v51 }
 0x112   :  { %v406_v60 = vpop.f32.mrf.mxu0 }
 0x113   :  { %v495_v63 = vpop.f32.mrf.mxu1  ;;  %722 = vmatmul.bf16.gmra.mxu2 %v578_v53  ;;  %811 = vmatmul.bf16.gmra.mxu3 %v578_v53  ;;  %v407_v2 = vadd.f32 %v3303_v4, %v406_v60 }
 0x115   :  { %445 = vmatmul.bf16.gmra.mxu0 %v3357_v54  ;;  %v496_v6 = vadd.f32 %v495_v63, %v407_v2 }
 0x116   :  { %534 = vmatmul.bf16.gmra.mxu1 %v3359_v55 }
 0x117   :  { %v554_v11 = vmax.f32 %v496_v6, 0.0 }
 0x11a   :  { %v408_v3 = vpop.f32.mrf.mxu0 }
 0x11b   :  { %v497_v5 = vpop.f32.mrf.mxu1  ;;  %v409_v9 = vadd.f32 %v3303_v4, %v408_v3 }
 0x11d   :  { %v498_v10 = vadd.f32 %v497_v5, %v409_v9 }
 0x11f   :  { %v555_v12 = vmax.f32 %v498_v10, 0.0 }
 0x121   :  { %v579_v13 = vpack.c.bf16 %v555_v12, %v554_v11 }
 0x122   :  { %v411_v14 = vpop.f32.mrf.mxu0 }
 0x123   :  { %v500_v15 = vpop.f32.mrf.mxu1  ;;  %727 = vmatmul.bf16.gmra.mxu2 %v579_v13  ;;  %816 = vmatmul.bf16.gmra.mxu3 %v579_v13  ;;  %v412_v18 = vadd.f32 %v3303_v4, %v411_v14 }
 0x125   :  { %v501_v29 = vadd.f32 %v500_v15, %v412_v18 }
 0x127   :  { %v556_v36 = vmax.f32 %v501_v29, 0.0 }
 0x12a   :  { %v413_v19 = vpop.f32.mrf.mxu0 }
 0x12b   :  { %v502_v24 = vpop.f32.mrf.mxu1  ;;  %v414_v30 = vadd.f32 %v3303_v4, %v413_v19 }
 0x12d   :  { %v503_v31 = vadd.f32 %v502_v24, %v414_v30 }
 0x12f   :  { %v557_v37 = vmax.f32 %v503_v31, 0.0 }
 0x131   :  { %v580_v40 = vpack.c.bf16 %v557_v37, %v556_v36 }
 0x132   :  { %v416_v41 = vpop.f32.mrf.mxu0 }
 0x133   :  { %v505_v42 = vpop.f32.mrf.mxu1  ;;  %732 = vmatmul.bf16.gmra.mxu2 %v580_v40  ;;  %821 = vmatmul.bf16.gmra.mxu3 %v580_v40  ;;  %v417_v49 = vadd.f32 %v3303_v4, %v416_v41 }
 0x135   :  { %v506_v52 = vadd.f32 %v505_v42, %v417_v49 }
 0x136   :  { %v3367_v43 = vpop.f32.mrf.mxu2  ;;  %v3369_v46 = vpop.f32.mrf.mxu3 }
 0x137   :  { %v558_v3 = vmax.f32 %v506_v52, 0.0 }
 0x13a   :  { %v418_v50 = vpop.f32.mrf.mxu0 }
 0x13b   :  { %v507_v51 = vpop.f32.mrf.mxu1  ;;  %v419_v53 = vadd.f32 %v3303_v4, %v418_v50 }
 0x13d   :  { %v508_v60 = vadd.f32 %v507_v51, %v419_v53 }
 0x13e   :  { %v3373_v63 = vpop.f32.mrf.mxu2  ;;  %v3375_v2 = vpop.f32.mrf.mxu3 }
 0x13f   :  { %v559_v5 = vmax.f32 %v508_v60, 0.0 }
 0x141   :  { %v581_v10 = vpack.c.bf16 %v559_v5, %v558_v3 }
 0x142   :  { %v421_v11 = vpop.f32.mrf.mxu0 }
 0x143   :  { %v510_v12 = vpop.f32.mrf.mxu1  ;;  %737 = vmatmul.bf16.gmra.mxu2 %v581_v10  ;;  %826 = vmatmul.bf16.gmra.mxu3 %v581_v10  ;;  %v422_v15 = vadd.f32 %v3303_v4, %v421_v11 }
 0x145   :  { %v511_v24 = vadd.f32 %v510_v12, %v422_v15 }
 0x146   :  { %v3381_v13 = vpop.f32.mrf.mxu2  ;;  %v3383_v14 = vpop.f32.mrf.mxu3 }
 0x147   :  { %v560_v37 = vmax.f32 %v511_v24, 0.0 }
 0x14a   :  { %v423_v18 = vpop.f32.mrf.mxu0 }
 0x14b   :  { %v512_v19 = vpop.f32.mrf.mxu1  ;;  %v424_v29 = vadd.f32 %v3303_v4, %v423_v18 }
 0x14d   :  { %v513_v30 = vadd.f32 %v512_v19, %v424_v29 }
 0x14e   :  { %v3387_v31 = vpop.f32.mrf.mxu2  ;;  %v3389_v36 = vpop.f32.mrf.mxu3 }
 0x14f   :  { %v561_v40 = vmax.f32 %v513_v30, 0.0 }
 0x151   :  { %v582_v49 = vpack.c.bf16 %v561_v40, %v560_v37 }
 0x152   :  { %v426_v50 = vpop.f32.mrf.mxu0 }
 0x153   :  { %v515_v51 = vpop.f32.mrf.mxu1  ;;  %742 = vmatmul.bf16.gmra.mxu2 %v582_v49  ;;  %831 = vmatmul.bf16.gmra.mxu3 %v582_v49  ;;  %v427_v60 = vadd.f32 %v3303_v4, %v426_v50 }
 0x155   :  { %v516_v10 = vadd.f32 %v515_v51, %v427_v60 }
 0x156   :  { %v3395_v52 = vpop.f32.mrf.mxu2  ;;  %v3397_v53 = vpop.f32.mrf.mxu3 }
 0x157   :  { %v562_v19 = vmax.f32 %v516_v10, 0.0 }
 0x15a   :  { %v428_v3 = vpop.f32.mrf.mxu0 }
 0x15b   :  { %v517_v5 = vpop.f32.mrf.mxu1  ;;  %v429_v11 = vadd.f32 %v3303_v4, %v428_v3 }
 0x15d   :  { %v518_v12 = vadd.f32 %v517_v5, %v429_v11 }
 0x15e   :  { %v3401_v15 = vpop.f32.mrf.mxu2  ;;  %v3403_v18 = vpop.f32.mrf.mxu3 }
 0x15f   :  { %v563_v24 = vmax.f32 %v518_v12, 0.0 }
 0x161   :  { %v583_v37 = vpack.c.bf16 %v563_v24, %v562_v19 }
 0x162   :  { %v431_v40 = vpop.f32.mrf.mxu0 }
 0x163   :  { %v520_v49 = vpop.f32.mrf.mxu1  ;;  %747 = vmatmul.bf16.gmra.mxu2 %v583_v37  ;;  %836 = vmatmul.bf16.gmra.mxu3 %v583_v37  ;;  %v432_v60 = vadd.f32 %v3303_v4, %v431_v40 }
 0x165   :  { %v521_v10 = vadd.f32 %v520_v49, %v432_v60 }
 0x166   :  { %v3409_v50 = vpop.f32.mrf.mxu2  ;;  %v3411_v51 = vpop.f32.mrf.mxu3 }
 0x167   :  { %v564_v19 = vmax.f32 %v521_v10, 0.0 }
 0x16a   :  { %v433_v3 = vpop.f32.mrf.mxu0 }
 0x16b   :  { %v522_v5 = vpop.f32.mrf.mxu1  ;;  %v434_v11 = vadd.f32 %v3303_v4, %v433_v3 }
 0x16d   :  { %v523_v12 = vadd.f32 %v522_v5, %v434_v11 }
 0x16e   :  { %v3415_v9 = vpop.f32.mrf.mxu2  ;;  %v3417_v6 = vpop.f32.mrf.mxu3 }
 0x16f   :  { %v565_v24 = vmax.f32 %v523_v12, 0.0 }
 0x171   :  { %v584_v41 = vpack.c.bf16 %v565_v24, %v564_v19 }
 0x172   :  { %v436_v40 = vpop.f32.mrf.mxu0 }
 0x173   :  { %v525_v30 = vpop.f32.mrf.mxu1  ;;  %752 = vmatmul.bf16.gmra.mxu2 %v584_v41  ;;  %841 = vmatmul.bf16.gmra.mxu3 %v584_v41  ;;  %v437_v3 = vadd.f32 %v3303_v4, %v436_v40 }
 0x175   :  { %v526_v11 = vadd.f32 %v525_v30, %v437_v3 }
 0x176   :  { %v3423_v49 = vpop.f32.mrf.mxu2  ;;  %v3425_v60 = vpop.f32.mrf.mxu3 }
 0x177   :  { %v566_v42 = vmax.f32 %v526_v11, 0.0 }
 0x17a   :  { %v438_v5 = vpop.f32.mrf.mxu0 }
 0x17b   :  { %v527_v10 = vpop.f32.mrf.mxu1  ;;  %v439_v12 = vadd.f32 %v3303_v4, %v438_v5 }
 0x17d   :  { %v528_v29 = vadd.f32 %v527_v10, %v439_v12 }
 0x17e   :  { %v715_v37 = vpop.f32.mrf.mxu2  ;;  %v804_v55 = vpop.f32.mrf.mxu3 }
 0x17f   :  { %v567_v19 = vmax.f32 %v528_v29, 0.0 }
 0x181   :  { %v585_v24 = vpack.c.bf16 %v567_v19, %v566_v42 }
 0x182   :  { %v441_v28 = vpop.f32.mrf.mxu0 }
 0x183   :  { %v530_v62 = vpop.f32.mrf.mxu1  ;;  %757 = vmatmul.bf16.gmra.mxu2 %v585_v24  ;;  %846 = vmatmul.bf16.gmra.mxu3 %v585_v24  ;;  %v442_v8 = vadd.f32 %v3303_v4, %v441_v28 }
 0x185   :  { %v531_v54 = vadd.f32 %v530_v62, %v442_v8 }
 0x186   :  { %v718_v41 = vpop.f32.mrf.mxu2  ;;  %v807_v35 = vpop.f32.mrf.mxu3 }
 0x187   :  { %v568_v12 = vmax.f32 %v531_v54, 0.0 }
 0x18a   :  { %v443_v40 = vpop.f32.mrf.mxu0 }
 0x18b   :  { %v532_v48 = vpop.f32.mrf.mxu1  ;;  %v444_v30 = vadd.f32 %v3303_v4, %v443_v40 }
 0x18d   :  { %v533_v3 = vadd.f32 %v532_v48, %v444_v30 }
 0x18e   :  { %v720_v5 = vpop.f32.mrf.mxu2  ;;  %v809_v10 = vpop.f32.mrf.mxu3 }
 0x18f   :  { %v569_v11 = vmax.f32 %v533_v3, 0.0 }
 0x191   :  { %v586_v29 = vpack.c.bf16 %v569_v11, %v568_v12 }
 0x192   :  { %v446_v42 = vpop.f32.mrf.mxu0 }
 0x193   :  { %v535_v19 = vpop.f32.mrf.mxu1  ;;  %762 = vmatmul.bf16.gmra.mxu2 %v586_v29  ;;  %851 = vmatmul.bf16.gmra.mxu3 %v586_v29  ;;  %v447_v25 = vadd.f32 %v3303_v4, %v446_v42 }
 0x195   :  { %v536_v1 = vadd.f32 %v535_v19, %v447_v25 }
 0x196   :  { %v723_v24 = vpop.f32.mrf.mxu2  ;;  %v812_v23 = vpop.f32.mrf.mxu3 }
 0x197   :  { %v570_v61 = vmax.f32 %v536_v1, 0.0  ;;  %v872_v1 = vpack.c.bf16 %v720_v5, %v718_v41 }
 0x19a   :  { %v448_v28 = vpop.f32.mrf.mxu0 }
 0x19b   :  { %v449_v8 = vadd.f32 %v3303_v4, %v448_v28  ;;  %v537_v62 = vpop.f32.mrf.mxu1  ;;  %v870_v28 = vpack.c.bf16 %v715_v37, %v3423_v49 }
 0x19d   :  { %v538_v40 = vadd.f32 %v537_v62, %v449_v8  ;;  %v871_v8 = vpack.c.bf16 %v804_v55, %v3425_v60  ;;  %v4299_v55 = vpack.c.bf16 %v3403_v18, %v3397_v53  ;;  %v4303_v53 = vpack.c.bf16 %v3375_v2, %v3369_v46 }
 0x19e   :  { %v725_v48 = vpop.f32.mrf.mxu2  ;;  %v814_v30 = vpop.f32.mrf.mxu3 }
 0x19f   :  { %v571_v54 = vmax.f32 %v538_v40, 0.0  ;;  %v874_v25 = vpack.c.bf16 %v725_v48, %v723_v24  ;;  %v875_v42 = vpack.c.bf16 %v814_v30, %v812_v23  ;;  %v4296_v23 = vpack.c.bf16 %v3415_v9, %v3409_v50 }
 0x1a0   :  { %v4300_v9 = vpack.c.bf16 %v3387_v31, %v3381_v13 }
 0x1a1   :  { %v587_v3 = vpack.c.bf16 %v571_v54, %v570_v61  ;;  %v873_v61 = vpack.c.bf16 %v809_v10, %v807_v35  ;;  %v4298_v35 = vpack.c.bf16 %v3401_v15, %v3395_v52  ;;  %v4302_v52 = vpack.c.bf16 %v3373_v63, %v3367_v43 }
 0x1a3   :  { %767 = vmatmul.bf16.gmra.mxu2 %v587_v3  ;;  %856 = vmatmul.bf16.gmra.mxu3 %v587_v3 }
 0x1a6   :  { %v728_v12 = vpop.f32.mrf.mxu2  ;;  %v817_v11 = vpop.f32.mrf.mxu3 }
 0x1ae   :  { %v730_v29 = vpop.f32.mrf.mxu2  ;;  %v819_v59 = vpop.f32.mrf.mxu3 }
 0x1af   :  { %v876_v34 = vpack.c.bf16 %v730_v29, %v728_v12  ;;  %v877_v17 = vpack.c.bf16 %v819_v59, %v817_v11 }
 0x1b1   :  { %900 = vmatpush.bf16.msrb.mxu0 %v876_v34  ;;  %1078 = vmatpush.bf16.msrb.mxu2 %v877_v17  ;;  %v4297_v34 = vpack.c.bf16 %v3417_v6, %v3411_v51  ;;  %v4301_v6 = vpack.c.bf16 %v3389_v36, %v3383_v14 }
 0x1b5   :  { %901 = vmatpush.bf16.msrb.mxu0 %v874_v25  ;;  %1079 = vmatpush.bf16.msrb.mxu2 %v875_v42 }
 0x1b6   :  { %v3433_v4 = vpop.f32.mrf.mxu2  ;;  %v3435_v19 = vpop.f32.mrf.mxu3 }
 0x1b9   :  { %902 = vmatpush.bf16.msrb.mxu0 %v872_v1  ;;  %1080 = vmatpush.bf16.msrb.mxu2 %v873_v61 }
 0x1bd   :  { %903 = vmatpush.bf16.msrb.mxu0 %v870_v28  ;;  %1081 = vmatpush.bf16.msrb.mxu2 %v871_v8 }
 0x1be   :  { %v3439_v59 = vpop.f32.mrf.mxu2  ;;  %v3441_v17 = vpop.f32.mrf.mxu3 }
 0x1c1   :  { %904 = vmatpush.bf16.msrb.mxu0 %v4296_v23  ;;  %1082 = vmatpush.bf16.msrb.mxu2 %v4297_v34  ;;  %v878_v34 = vpack.c.bf16 %v3439_v59, %v3433_v4 }
 0x1c5   :  { %905 = vmatpush.bf16.msrb.mxu0 %v4298_v35  ;;  %1083 = vmatpush.bf16.msrb.mxu2 %v4299_v55  ;;  %v4309_v35 = vld [vmem:[#allocation15_spill] sm:$0xff] }
 0x1c6   :  { %v3455_v37 = vpop.f32.mrf.mxu2  ;;  %v3457_v49 = vpop.f32.mrf.mxu3 }
 0x1c9   :  { %906 = vmatpush.bf16.msrb.mxu0 %v4300_v9  ;;  %1084 = vmatpush.bf16.msrb.mxu2 %v4301_v6 }
 0x1cd   :  { %907 = vmatpush.bf16.msrb.mxu0 %v4302_v52  ;;  %1085 = vmatpush.bf16.msrb.mxu2 %v4303_v53  ;;  %v4312_v53 = vld [vmem:[#allocation8_spill] sm:$0xff] }
 0x1ce   :  { %v3471_v15 = vpop.f32.mrf.mxu2  ;;  %v3473_v18 = vpop.f32.mrf.mxu3 }
 0x1cf   :  { %v880_v8 = vpack.c.bf16 %v3471_v15, %v3455_v37  ;;  %v881_v23 = vpack.c.bf16 %v3473_v18, %v3457_v49 }
 0x1d0   :  { %1086 = vmatmul.bf16.vlgmr.msrb.gmra.mxu2 %v3152_v20  ;;  %908 = vmatmul.bf16.vlgmr.msrb.gmra.mxu0 %v3152_v20 }
 0x1d6   :  { %v743_v13 = vpop.f32.mrf.mxu2  ;;  %v832_v31 = vpop.f32.mrf.mxu3 }
 0x1de   :  { %v745_v14 = vpop.f32.mrf.mxu2  ;;  %v834_v36 = vpop.f32.mrf.mxu3 }
 0x1df   :  { %v883_v28 = vpack.c.bf16 %v834_v36, %v832_v31 }
 0x1e0   :  { %1091 = vmatmul.bf16.gmra.mxu2 %v3158_v26  ;;  %913 = vmatmul.bf16.gmra.mxu0 %v3158_v26 }
 0x1e6   :  { %v748_v43 = vpop.f32.mrf.mxu2  ;;  %v837_v63 = vpop.f32.mrf.mxu3 }
 0x1ee   :  { %v750_v46 = vpop.f32.mrf.mxu2  ;;  %v839_v2 = vpop.f32.mrf.mxu3 }
 0x1ef   :  { %v884_v1 = vpack.c.bf16 %v750_v46, %v748_v43  ;;  %v885_v61 = vpack.c.bf16 %v839_v2, %v837_v63  ;;  %v4314_v2 = vld [vmem:[#allocation9_spill] sm:$0xff] }
 0x1f0   :  { %1096 = vmatmul.bf16.gmra.mxu2 %v3164_v32  ;;  %918 = vmatmul.bf16.gmra.mxu0 %v3164_v32 }
 0x1f6   :  { %v753_v50 = vpop.f32.mrf.mxu2  ;;  %v842_v51 = vpop.f32.mrf.mxu3 }
 0x1fe   :  { %v755_v60 = vpop.f32.mrf.mxu2  ;;  %v844_v20 = vpop.f32.mrf.mxu3 }
 0x1ff   :  { %v887_v42 = vpack.c.bf16 %v844_v20, %v842_v51 }
 0x200   :  { %1101 = vmatmul.bf16.gmra.mxu2 %v3170_v38  ;;  %923 = vmatmul.bf16.gmra.mxu0 %v3170_v38 }
 0x206   :  { %v758_v41 = vpop.f32.mrf.mxu2  ;;  %v847_v5 = vpop.f32.mrf.mxu3 }
 0x20e   :  { %v760_v10 = vpop.f32.mrf.mxu2  ;;  %v849_v26 = vpop.f32.mrf.mxu3 }
 0x20f   :  { %v888_v29 = vpack.c.bf16 %v760_v10, %v758_v41  ;;  %v889_v25 = vpack.c.bf16 %v849_v26, %v847_v5 }
 0x210   :  { %1106 = vmatmul.bf16.gmra.mxu2 %v3176_v44  ;;  %928 = vmatmul.bf16.gmra.mxu0 %v3176_v44 }
 0x216   :  { %v763_v24 = vpop.f32.mrf.mxu2  ;;  %v852_v62 = vpop.f32.mrf.mxu3 }
 0x21e   :  { %v765_v40 = vpop.f32.mrf.mxu2  ;;  %v854_v32 = vpop.f32.mrf.mxu3 }
 0x21f   :  { %v890_v44 = vpack.c.bf16 %v765_v40, %v763_v24  ;;  %v891_v11 = vpack.c.bf16 %v854_v32, %v852_v62  ;;  %v4315_v24 = vld [vmem:[#allocation10_spill] sm:$0xff] }
 0x220   :  { %1111 = vmatmul.bf16.gmra.mxu2 %v3194_v56  ;;  %933 = vmatmul.bf16.gmra.mxu0 %v3194_v56  ;;  %v886_v56 = vpack.c.bf16 %v755_v60, %v753_v50 }
 0x226   :  { %v768_v48 = vpop.f32.mrf.mxu2  ;;  %v857_v30 = vpop.f32.mrf.mxu3 }
 0x22e   :  { %v770_v54 = vpop.f32.mrf.mxu2  ;;  %v859_v38 = vpop.f32.mrf.mxu3 }
 0x22f   :  { %v892_v3 = vpack.c.bf16 %v770_v54, %v768_v48  ;;  %v893_v12 = vpack.c.bf16 %v859_v38, %v857_v30 }
 0x230   :  { %1116 = vmatmul.bf16.gmra.mxu2 %v3236_v16  ;;  %938 = vmatmul.bf16.gmra.mxu0 %v3236_v16  ;;  %v882_v16 = vpack.c.bf16 %v745_v14, %v743_v13  ;;  %v4313_v13 = vld [vmem:[#allocation17_spill] sm:$0xff] }
 0x231   :  { %989 = vmatpush.bf16.msrb.mxu1 %v892_v3  ;;  %1167 = vmatpush.bf16.msrb.mxu3 %v893_v12  ;;  %v4316_v12 = vld [vmem:[#allocation12_spill] sm:$0xff] }
 0x235   :  { %990 = vmatpush.bf16.msrb.mxu1 %v890_v44  ;;  %1168 = vmatpush.bf16.msrb.mxu3 %v891_v11 }
 0x239   :  { %991 = vmatpush.bf16.msrb.mxu1 %v888_v29  ;;  %1169 = vmatpush.bf16.msrb.mxu3 %v889_v25 }
 0x23d   :  { %992 = vmatpush.bf16.msrb.mxu1 %v886_v56  ;;  %1170 = vmatpush.bf16.msrb.mxu3 %v887_v42 }
 0x240   :  { %1121 = vmatmul.bf16.gmra.mxu2 %v3290_v58  ;;  %943 = vmatmul.bf16.gmra.mxu0 %v3290_v58  ;;  %v879_v58 = vpack.c.bf16 %v3441_v17, %v3435_v19  ;;  %v4308_v19 = vld [vmem:[#allocation7_spill] sm:$0xff] }
 0x241   :  { %993 = vmatpush.bf16.msrb.mxu1 %v884_v1  ;;  %1171 = vmatpush.bf16.msrb.mxu3 %v885_v61 }
 0x245   :  { %994 = vmatpush.bf16.msrb.mxu1 %v882_v16  ;;  %1172 = vmatpush.bf16.msrb.mxu3 %v883_v28  ;;  %v4317_v16 = vld [vmem:[#allocation14_spill] sm:$0xff] }
 0x249   :  { %995 = vmatpush.bf16.msrb.mxu1 %v880_v8  ;;  %1173 = vmatpush.bf16.msrb.mxu3 %v881_v23 }
 0x24d   :  { %996 = vmatpush.bf16.msrb.mxu1 %v878_v34  ;;  %1174 = vmatpush.bf16.msrb.mxu3 %v879_v58 }
 0x250   :  { %1175 = vmatmul.bf16.vlgmr.msrb.gmra.mxu3 %v3154_v21  ;;  %1126 = vmatmul.bf16.gmra.mxu2 %v3296_v0 }
 0x251   :  { %997 = vmatmul.bf16.vlgmr.msrb.gmra.mxu1 %v3154_v21  ;;  %948 = vmatmul.bf16.gmra.mxu0 %v3296_v0  ;;  %v4305_v0 = vld [vmem:[#allocation11_spill] sm:$0xff] }
 0x253   :  { %v1087_v21 = vpop.f32.mrf.mxu2 }
 0x260   :  { %1180 = vmatmul.bf16.gmra.mxu3 %v3160_v27  ;;  %1131 = vmatmul.bf16.gmra.mxu2 %v3309_v22 }
 0x261   :  { %1002 = vmatmul.bf16.gmra.mxu1 %v3160_v27  ;;  %953 = vmatmul.bf16.gmra.mxu0 %v3309_v22  ;;  %v4304_v27 = vld [vmem:[#allocation5_spill] sm:$0xff] }
 0x270   :  { %1185 = vmatmul.bf16.gmra.mxu3 %v3166_v33  ;;  %1136 = vmatmul.bf16.gmra.mxu2 %v3317_v47 }
 0x271   :  { %1007 = vmatmul.bf16.gmra.mxu1 %v3166_v33  ;;  %958 = vmatmul.bf16.gmra.mxu0 %v3317_v47  ;;  %v1089_v33 = vpop.f32.mrf.mxu2 }
 0x279   :  { %v1092_v22 = vpop.f32.mrf.mxu2 }
 0x280   :  { %1190 = vmatmul.bf16.gmra.mxu3 %v3172_v39  ;;  %1141 = vmatmul.bf16.gmra.mxu2 %v3325_v7 }
 0x281   :  { %1012 = vmatmul.bf16.gmra.mxu1 %v3172_v39  ;;  %963 = vmatmul.bf16.gmra.mxu0 %v3325_v7  ;;  %v4306_v39 = vld [vmem:[#allocation6_spill] sm:$0xff]  ;;  %v1094_v47 = vpop.f32.mrf.mxu2  ;;  %v4307_v7 = vld [vmem:[#allocation13_spill] sm:$0xff] }
 0x290   :  { %1195 = vmatmul.bf16.gmra.mxu3 %v3178_v45  ;;  %1146 = vmatmul.bf16.gmra.mxu2 %v4305_v0 }
 0x291   :  { %1017 = vmatmul.bf16.gmra.mxu1 %v3178_v45  ;;  %v894_v45 = vld [vmem:[%s4213_s4] sm:$0x3] }
 0x292   :  { %v3528_v4 = vperm.slane %v894_v45, 1 }
 0x294   :  { %v1088_v59 = vadd.f32 %v1087_v21, %v3528_v4  ;;  %v1090_v9 = vadd.f32 %v1089_v33, %v3528_v4  ;;  %v1093_v15 = vadd.f32 %v1092_v22, %v3528_v4  ;;  %v1095_v43 = vadd.f32 %v1094_v47, %v3528_v4  ;;  %v4318_v33 = vld [vmem:[#allocation16_spill] sm:$0xff] }
 0x2a0   :  { %1200 = vmatmul.bf16.gmra.mxu3 %v3196_v57  ;;  %1151 = vmatmul.bf16.gmra.mxu2 %v4307_v7 }
 0x2a1   :  { %1022 = vmatmul.bf16.gmra.mxu1 %v3196_v57  ;;  %v1097_v57 = vpop.f32.mrf.mxu2 }
 0x2a2   :  { %v1098_v50 = vadd.f32 %v1097_v57, %v3528_v4 }
 0x2a9   :  { %v1099_v17 = vpop.f32.mrf.mxu2 }
 0x2aa   :  { %v1100_v5 = vadd.f32 %v1099_v17, %v3528_v4 }
 0x2b0   :  { %1205 = vmatmul.bf16.gmra.mxu3 %v4304_v27  ;;  %1156 = vmatmul.bf16.gmra.mxu2 %v4309_v35 }
 0x2b1   :  { %1027 = vmatmul.bf16.gmra.mxu1 %v4304_v27  ;;  %v1102_v49 = vpop.f32.mrf.mxu2 }
 0x2b2   :  { %v1103_v62 = vadd.f32 %v1102_v49, %v3528_v4 }
 0x2b9   :  { %v1104_v18 = vpop.f32.mrf.mxu2 }
 0x2ba   :  { %v1105_v54 = vadd.f32 %v1104_v18, %v3528_v4 }
 0x2c0   :  { %1210 = vmatmul.bf16.gmra.mxu3 %v4306_v39  ;;  %1161 = vmatmul.bf16.gmra.mxu2 %v4313_v13 }
 0x2c1   :  { %1032 = vmatmul.bf16.gmra.mxu1 %v4306_v39  ;;  %v1107_v36 = vpop.f32.mrf.mxu2 }
 0x2c2   :  { %v1108_v44 = vadd.f32 %v1107_v36, %v3528_v4 }
 0x2c9   :  { %v1109_v51 = vpop.f32.mrf.mxu2 }
 0x2ca   :  { %v1110_v56 = vadd.f32 %v1109_v51, %v3528_v4 }
 0x2d0   :  { %1215 = vmatmul.bf16.gmra.mxu3 %v4308_v19 }
 0x2d1   :  { %1037 = vmatmul.bf16.gmra.mxu1 %v4308_v19  ;;  %v1112_v41 = vpop.f32.mrf.mxu2 }
 0x2d2   :  { %v1113_v28 = vadd.f32 %v1112_v41, %v3528_v4 }
 0x2d3   :  { %v1176_v55 = vpop.f32.mrf.mxu3 }
 0x2d4   :  { %v3534_v37 = vadd.f32 %v1176_v55, %v1088_v59  ;;  %v4319_v55 = vld [vmem:[#allocation18_spill] sm:$0xff] }
 0x2d6   :  { %4310 = vst [vmem:[#allocation5_spill] sm:$0xff] %v3534_v37  ;;  %1352 = vrot.lane.b32.xlu0 %v3534_v37, %s3063_s23 }
 0x2d9   :  { %v1114_v40 = vpop.f32.mrf.mxu2 }
 0x2da   :  { %v1115_v58 = vadd.f32 %v1114_v40, %v3528_v4 }
 0x2db   :  { %v1178_v6 = vpop.f32.mrf.mxu3 }
 0x2dc   :  { %v3539_v52 = vadd.f32 %v1178_v6, %v1090_v9 }
 0x2de   :  { %4311 = vst [vmem:[#allocation11_spill] sm:$0xff] %v3539_v52  ;;  %1354 = vrot.lane.b32.xlu0 %v3539_v52, %s3063_s23 }
 0x2e0   :  { %1220 = vmatmul.bf16.gmra.mxu3 %v4312_v53 }
 0x2e1   :  { %1042 = vmatmul.bf16.gmra.mxu1 %v4312_v53  ;;  %v1117_v30 = vpop.f32.mrf.mxu2 }
 0x2e2   :  { %v1118_v22 = vadd.f32 %v1117_v30, %v3528_v4 }
 0x2e3   :  { %v1181_v31 = vpop.f32.mrf.mxu3 }
 0x2e4   :  { %v3547_v14 = vadd.f32 %v1181_v31, %v1093_v15 }
 0x2e6   :  { %1356 = vrot.lane.b32.xlu1 %v3547_v14, %s3063_s23 }
 0x2e9   :  { %v1119_v29 = vpop.f32.mrf.mxu2 }
 0x2ea   :  { %v1120_v57 = vadd.f32 %v1119_v29, %v3528_v4 }
 0x2eb   :  { %v1183_v63 = vpop.f32.mrf.mxu3 }
 0x2ec   :  { %v3552_v46 = vadd.f32 %v1183_v63, %v1095_v43 }
 0x2ee   :  { %1358 = vrot.lane.b32.xlu1 %v3552_v46, %s3063_s23 }
 0x2f0   :  { %1225 = vmatmul.bf16.gmra.mxu3 %v4314_v2 }
 0x2f1   :  { %1047 = vmatmul.bf16.gmra.mxu1 %v4314_v2  ;;  %v1122_v61 = vpop.f32.mrf.mxu2 }
 0x2f2   :  { %v1123_v49 = vadd.f32 %v1122_v61, %v3528_v4 }
 0x2f3   :  { %v1186_v60 = vpop.f32.mrf.mxu3 }
 0x2f4   :  { %v3559_v20 = vadd.f32 %v1186_v60, %v1098_v50 }
 0x2f6   :  { %1360 = vrot.lane.b32.xlu2 %v3559_v20, %s3063_s23 }
 0x2f9   :  { %v1124_v34 = vpop.f32.mrf.mxu2 }
 0x2fa   :  { %v1125_v18 = vadd.f32 %v1124_v34, %v3528_v4 }
 0x2fb   :  { %v1188_v10 = vpop.f32.mrf.mxu3 }
 0x2fc   :  { %v3564_v26 = vadd.f32 %v1188_v10, %v1100_v5 }
 0x2fe   :  { %1362 = vrot.lane.b32.xlu2 %v3564_v26, %s3063_s23 }
 0x300   :  { %1230 = vmatmul.bf16.gmra.mxu3 %v4315_v24 }
 0x301   :  { %1052 = vmatmul.bf16.gmra.mxu1 %v4315_v24  ;;  %v1127_v39 = vpop.f32.mrf.mxu2 }
 0x302   :  { %v1128_v2 = vadd.f32 %v1127_v39, %v3528_v4 }
 0x303   :  { %v1191_v32 = vpop.f32.mrf.mxu3 }
 0x304   :  { %v3571_v48 = vadd.f32 %v1191_v32, %v1103_v62 }
 0x306   :  { %1364 = vrot.lane.b32.xlu0 %v3571_v48, %s3063_s23 }
 0x309   :  { %v1129_v59 = vpop.f32.mrf.mxu2 }
 0x30a   :  { %v1130_v24 = vadd.f32 %v1129_v59, %v3528_v4 }
 0x30b   :  { %v1193_v38 = vpop.f32.mrf.mxu3 }
 0x30c   :  { %v3576_v3 = vadd.f32 %v1193_v38, %v1105_v54 }
 0x30e   :  { %1366 = vrot.lane.b32.xlu1 %v3576_v3, %s3063_s23 }
 0x310   :  { %1235 = vmatmul.bf16.gmra.mxu3 %v4316_v12 }
 0x311   :  { %v1132_v53 = vpop.f32.mrf.mxu2 }
 0x312   :  { %v1133_v30 = vadd.f32 %v1132_v53, %v3528_v4 }
 0x313   :  { %v1196_v11 = vpop.f32.mrf.mxu3 }
 0x314   :  { %v3582_v25 = vadd.f32 %v1196_v11, %v1108_v44 }
 0x316   :  { %1368 = vrot.lane.b32.xlu2 %v3582_v25, %s3063_s23 }
 0x319   :  { %v1134_v63 = vpop.f32.mrf.mxu2 }
 0x31b   :  { %v1198_v42 = vpop.f32.mrf.mxu3 }
 0x31c   :  { %v3587_v1 = vadd.f32 %v1198_v42, %v1110_v56  ;;  %v1135_v42 = vadd.f32 %v1134_v63, %v3528_v4 }
 0x31e   :  { %1370 = vrot.lane.b32.xlu0 %v3587_v1, %s3063_s23 }
 0x320   :  { %1240 = vmatmul.bf16.gmra.mxu3 %v4317_v16 }
 0x321   :  { %v1137_v10 = vpop.f32.mrf.mxu2 }
 0x323   :  { %v1201_v8 = vpop.f32.mrf.mxu3 }
 0x324   :  { %v3593_v23 = vadd.f32 %v1201_v8, %v1113_v28 }
 0x326   :  { %1372 = vrot.lane.b32.xlu1 %v3593_v23, %s3063_s23 }
 0x329   :  { %v1139_v44 = vpop.f32.mrf.mxu2 }
 0x32a   :  { %v1140_v59 = vadd.f32 %v1139_v44, %v3528_v4 }
 0x32b   :  { %v1203_v21 = vpop.f32.mrf.mxu3 }
 0x32c   :  { %v3598_v27 = vadd.f32 %v1203_v21, %v1115_v58  ;;  %v1138_v58 = vadd.f32 %v1137_v10, %v3528_v4 }
 0x32e   :  { %1374 = vrot.lane.b32.xlu2 %v3598_v27, %s3063_s23 }
 0x330   :  { %1245 = vmatmul.bf16.gmra.mxu3 %v4318_v33 }
 0x331   :  { %v1142_v34 = vpop.f32.mrf.mxu2 }
 0x333   :  { %v1206_v47 = vpop.f32.mrf.mxu3 }
 0x334   :  { %v3604_v45 = vadd.f32 %v1206_v47, %v1118_v22 }
 0x336   :  { %1376 = vrot.lane.b32.xlu0 %v3604_v45, %s3063_s23 }
 0x33b   :  { %v1208_v19 = vpop.f32.mrf.mxu3 }
 0x33c   :  { %v3609_v17 = vadd.f32 %v1208_v19, %v1120_v57  ;;  %v1144_v57 = vpop.f32.mrf.mxu2 }
 0x33e   :  { %1378 = vrot.lane.b32.xlu1 %v3609_v17, %s3063_s23 }
 0x340   :  { %1250 = vmatmul.bf16.gmra.mxu3 %v4319_v55 }
 0x343   :  { %v1211_v9 = vpop.f32.mrf.mxu3 }
 0x344   :  { %v3615_v6 = vadd.f32 %v1211_v9, %v1123_v49 }
 0x346   :  { %1380 = vrot.lane.b32.xlu2 %v3615_v6, %s3063_s23 }
 0x348   :  { %v1353_v15 = vpop.permute.xlu0 %1352 }
 0x349   :  { %v3623_v43 = vmax.f32 %v3534_v37, %v1353_v15  ;;  %v1143_v15 = vadd.f32 %v1142_v34, %v3528_v4 }
 0x34b   :  { %v1213_v31 = vpop.f32.mrf.mxu3 }
 0x34c   :  { %v3620_v36 = vadd.f32 %v1213_v31, %v1125_v18  ;;  %v1147_v31 = vpop.f32.mrf.mxu2 }
 0x34e   :  { %1382 = vrot.lane.b32.xlu0 %v3620_v36, %s3063_s23  ;;  %1608 = vrot.lane.b32.xlu2 %v3623_v43, %s3064_s24 }
 0x350   :  { %v1355_v50 = vpop.permute.xlu0 %1354  ;;  %v1361_v56 = vpop.permute.xlu2 %1360 }
 0x351   :  { %v3633_v41 = vmax.f32 %v3539_v52, %v1355_v50  ;;  %v3663_v8 = vmax.f32 %v3559_v20, %v1361_v56 }
 0x353   :  { %v1216_v51 = vpop.f32.mrf.mxu3 }
 0x354   :  { %v3630_v60 = vadd.f32 %v1216_v51, %v1128_v2 }
 0x356   :  { %1384 = vrot.lane.b32.xlu1 %v3630_v60, %s3063_s23  ;;  %1610 = vrot.lane.b32.xlu0 %v3633_v41, %s3064_s24 }
 0x358   :  { %v1357_v5 = vpop.permute.xlu1 %1356  ;;  %v1363_v21 = vpop.permute.xlu2 %1362 }
 0x359   :  { %v3643_v32 = vmax.f32 %v3547_v14, %v1357_v5  ;;  %v3673_v47 = vmax.f32 %v3564_v26, %v1363_v21  ;;  %v1145_v5 = vadd.f32 %v1144_v57, %v3528_v4 }
 0x35b   :  { %v1218_v62 = vpop.f32.mrf.mxu3 }
 0x35c   :  { %v3640_v40 = vadd.f32 %v1218_v62, %v1130_v24  ;;  %v1149_v24 = vpop.f32.mrf.mxu2 }
 0x35e   :  { %1612 = vrot.lane.b32.xlu1 %v3643_v32, %s3064_s24  ;;  %1386 = vrot.lane.b32.xlu2 %v3640_v40, %s3063_s23 }
 0x360   :  { %v1359_v54 = vpop.permute.xlu1 %1358 }
 0x361   :  { %v3653_v29 = vmax.f32 %v3552_v46, %v1359_v54  ;;  %v1148_v54 = vadd.f32 %v1147_v31, %v3528_v4 }
 0x363   :  { %v1221_v38 = vpop.f32.mrf.mxu3 }
 0x364   :  { %v3650_v11 = vadd.f32 %v1221_v38, %v1133_v30 }
 0x366   :  { %1388 = vrot.lane.b32.xlu0 %v3650_v11, %s3063_s23  ;;  %1614 = vrot.lane.b32.xlu2 %v3653_v29, %s3064_s24 }
 0x36b   :  { %v1223_v61 = vpop.f32.mrf.mxu3 }
 0x36c   :  { %v3660_v28 = vadd.f32 %v1223_v61, %v1135_v42  ;;  %v1152_v61 = vpop.f32.mrf.mxu2 }
 0x36e   :  { %1390 = vrot.lane.b32.xlu1 %v3660_v28, %s3063_s23  ;;  %1616 = vrot.lane.b32.xlu0 %v3663_v8, %s3064_s24 }
 0x370   :  { %v1369_v51 = vpop.permute.xlu2 %1368 }
 0x371   :  { %v3703_v30 = vmax.f32 %v3582_v25, %v1369_v51 }
 0x373   :  { %v1226_v22 = vpop.f32.mrf.mxu3 }
 0x374   :  { %v3670_v39 = vadd.f32 %v1226_v22, %v1138_v58  ;;  %v1150_v58 = vadd.f32 %v1149_v24, %v3528_v4 }
 0x376   :  { %1618 = vrot.lane.b32.xlu1 %v3673_v47, %s3064_s24  ;;  %1392 = vrot.lane.b32.xlu2 %v3670_v39, %s3063_s23 }
 0x378   :  { %v1365_v19 = vpop.permute.xlu0 %1364 }
 0x379   :  { %v3683_v53 = vmax.f32 %v3571_v48, %v1365_v19  ;;  %v1154_v19 = vpop.f32.mrf.mxu2 }
 0x37b   :  { %v1228_v49 = vpop.f32.mrf.mxu3 }
 0x37c   :  { %v3680_v9 = vadd.f32 %v1228_v49, %v1140_v59  ;;  %v1153_v59 = vadd.f32 %v1152_v61, %v3528_v4 }
 0x37e   :  { %1394 = vrot.lane.b32.xlu0 %v3680_v9, %s3063_s23  ;;  %1620 = vrot.lane.b32.xlu2 %v3683_v53, %s3064_s24 }
 0x380   :  { %v1367_v18 = vpop.permute.xlu1 %1366 }
 0x381   :  { %v3693_v50 = vmax.f32 %v3576_v3, %v1367_v18  ;;  %v1157_v51 = vpop.f32.mrf.mxu2 }
 0x383   :  { %v1231_v63 = vpop.f32.mrf.mxu3 }
 0x384   :  { %v3690_v2 = vadd.f32 %v1231_v63, %v1143_v15 }
 0x386   :  { %1396 = vrot.lane.b32.xlu1 %v3690_v2, %s3063_s23  ;;  %1622 = vrot.lane.b32.xlu0 %v3693_v50, %s3064_s24 }
 0x388   :  { %v1375_v49 = vpop.permute.xlu2 %1374 }
 0x389   :  { %v3733_v31 = vmax.f32 %v3598_v27, %v1375_v49 }
 0x38b   :  { %v1233_v10 = vpop.f32.mrf.mxu3 }
 0x38c   :  { %v3700_v62 = vadd.f32 %v1233_v10, %v1145_v5  ;;  %v1155_v5 = vadd.f32 %v1154_v19, %v3528_v4 }
 0x38e   :  { %1624 = vrot.lane.b32.xlu1 %v3703_v30, %s3064_s24  ;;  %1398 = vrot.lane.b32.xlu2 %v3700_v62, %s3063_s23 }
 0x390   :  { %v1371_v38 = vpop.permute.xlu0 %1370 }
 0x391   :  { %v3713_v42 = vmax.f32 %v3587_v1, %v1371_v38 }
 0x393   :  { %v1236_v44 = vpop.f32.mrf.mxu3 }
 0x394   :  { %v3710_v56 = vadd.f32 %v1236_v44, %v1148_v54  ;;  %v1158_v44 = vadd.f32 %v1157_v51, %v3528_v4 }
 0x396   :  { %1400 = vrot.lane.b32.xlu0 %v3710_v56, %s3063_s23  ;;  %1626 = vrot.lane.b32.xlu2 %v3713_v42, %s3064_s24 }
 0x398   :  { %v1373_v34 = vpop.permute.xlu1 %1372 }
 0x399   :  { %v3723_v57 = vmax.f32 %v3593_v23, %v1373_v34 }
 0x39b   :  { %v1238_v21 = vpop.f32.mrf.mxu3 }
 0x39c   :  { %v3720_v22 = vadd.f32 %v1238_v21, %v1150_v58  ;;  %v1159_v58 = vpop.f32.mrf.mxu2 }
 0x39e   :  { %1402 = vrot.lane.b32.xlu1 %v3720_v22, %s3063_s23  ;;  %1628 = vrot.lane.b32.xlu0 %v3723_v57, %s3064_s24 }
 0x3a0   :  { %v1381_v10 = vpop.permute.xlu2 %1380 }
 0x3a3   :  { %v1241_v15 = vpop.f32.mrf.mxu3 }
 0x3a4   :  { %v3730_v18 = vadd.f32 %v1241_v15, %v1153_v59  ;;  %v1160_v15 = vadd.f32 %v1159_v58, %v3528_v4 }
 0x3a6   :  { %1630 = vrot.lane.b32.xlu1 %v3733_v31, %s3064_s24  ;;  %1404 = vrot.lane.b32.xlu2 %v3730_v18, %s3063_s23 }
 0x3a8   :  { %v1377_v63 = vpop.permute.xlu0 %1376  ;;  %v1609_v59 = vpop.permute.xlu2 %1608 }
 0x3a9   :  { %v3743_v38 = vmax.f32 %v3604_v45, %v1377_v63  ;;  %v1704_v49 = vsub.f32 %v3534_v37, %v1609_v59 }
 0x3ab   :  { %v1243_v24 = vpop.f32.mrf.mxu3  ;;  %v1736_v63 = vmul.f32 1.442695, %v1704_v49 }
 0x3ac   :  { %v3740_v54 = vadd.f32 %v1243_v24, %v1155_v5  ;;  %v3762_v5 = vmax.f32 %v3615_v6, %v1381_v10 }
 0x3ad   :  { %2841 = vpow2.f32 %v1736_v63 }
 0x3ae   :  { %1406 = vrot.lane.b32.xlu0 %v3740_v54, %s3063_s23  ;;  %1632 = vrot.lane.b32.xlu2 %v3743_v38, %s3064_s24  ;;  %4321 = vst [vmem:[#allocation13_spill] sm:$0xff] %v3762_v5 }
 0x3b0   :  { %v1379_v61 = vpop.permute.xlu1 %1378 }
 0x3b1   :  { %v3753_v19 = vmax.f32 %v3609_v17, %v1379_v61 }
 0x3b3   :  { %v1246_v34 = vpop.f32.mrf.mxu3  ;;  %4320 = vst [vmem:[#allocation6_spill] sm:$0xff] %v3753_v19  ;;  %v2842_v55 = vpop.eup %2841 }
 0x3b4   :  { %v3750_v21 = vadd.f32 %v1246_v34, %v1158_v44  ;;  %v1162_v44 = vpop.f32.mrf.mxu2 }
 0x3b5   :  { %v1163_v59 = vadd.f32 %v1162_v44, %v3528_v4 }
 0x3b6   :  { %1408 = vrot.lane.b32.xlu1 %v3750_v21, %s3063_s23  ;;  %1634 = vrot.lane.b32.xlu0 %v3753_v19, %s3064_s24 }
 0x3b8   :  { %v1387_v61 = vpop.permute.xlu2 %1386 }
 0x3bb   :  { %v1248_v51 = vpop.f32.mrf.mxu3 }
 0x3bc   :  { %v3764_v24 = vadd.f32 %v1248_v51, %v1160_v15  ;;  %v1164_v15 = vpop.f32.mrf.mxu2 }
 0x3be   :  { %1636 = vrot.lane.b32.xlu1 %v3762_v5, %s3064_s24  ;;  %1410 = vrot.lane.b32.xlu2 %v3764_v24, %s3063_s23 }
 0x3c0   :  { %v1383_v34 = vpop.permute.xlu0 %1382  ;;  %v1615_v13 = vpop.permute.xlu2 %1614 }
 0x3c1   :  { %v3774_v10 = vmax.f32 %v3620_v36, %v1383_v34  ;;  %v1707_v5 = vsub.f32 %v3552_v46, %v1615_v13 }
 0x3c3   :  { %v1251_v58 = vpop.f32.mrf.mxu3 }
 0x3c4   :  { %v3771_v49 = vadd.f32 %v1251_v58, %v1163_v59  ;;  %v1165_v59 = vadd.f32 %v1164_v15, %v3528_v4 }
 0x3c6   :  { %1832 = vrot.lane.b32.xlu1 %v2842_v55, %s3063_s23  ;;  %1412 = vrot.lane.b32.xlu0 %v3771_v49, %s3063_s23 }
 0x3c7   :  { %1638 = vrot.lane.b32.xlu2 %v3774_v10, %s3064_s24 }
 0x3c8   :  { %v1385_v63 = vpop.permute.xlu1 %1384  ;;  %v1611_v51 = vpop.permute.xlu0 %1610 }
 0x3c9   :  { %v1705_v44 = vsub.f32 %v3539_v52, %v1611_v51  ;;  %v3784_v34 = vmax.f32 %v3630_v60, %v1385_v63  ;;  %v3795_v63 = vmax.f32 %v3640_v40, %v1387_v61 }
 0x3cb   :  { %v1738_v58 = vmul.f32 1.442695, %v1705_v44  ;;  %v1253_v19 = vpop.f32.mrf.mxu3  ;;  %4322 = vst [vmem:[#allocation7_spill] sm:$0xff] %v3784_v34  ;;  %v1742_v44 = vmul.f32 1.442695, %v1707_v5 }
 0x3cc   :  { %v3786_v55 = vadd.f32 %v1253_v19, %v1165_v59  ;;  %4323 = vst [vmem:[#allocation8_spill] sm:$0xff] %v3795_v63 }
 0x3cd   :  { %2843 = vpow2.f32 %v1738_v58 }
 0x3ce   :  { %1414 = vrot.lane.b32.xlu1 %v3786_v55, %s3063_s23  ;;  %1640 = vrot.lane.b32.xlu0 %v3784_v34, %s3064_s24 }
 0x3d0   :  { %v1613_v51 = vpop.permute.xlu1 %1612  ;;  %v1393_v4 = vpop.permute.xlu2 %1392 }
 0x3d1   :  { %v1706_v33 = vsub.f32 %v3547_v14, %v1613_v51 }
 0x3d3   :  { %v2844_v15 = vpop.eup %2843  ;;  %v1740_v35 = vmul.f32 1.442695, %v1706_v33 }
 0x3d4   :  { %1834 = vrot.lane.b32.xlu2 %v2844_v15, %s3063_s23 }
 0x3d5   :  { %2845 = vpow2.f32 %v1740_v35 }
 0x3d6   :  { %1642 = vrot.lane.b32.xlu1 %v3795_v63, %s3064_s24  ;;  %2847 = vpow2.f32 %v1742_v44 }
 0x3d8   :  { %v1389_v19 = vpop.permute.xlu0 %1388  ;;  %v1621_v33 = vpop.permute.xlu2 %1620 }
 0x3d9   :  { %v3801_v13 = vmax.f32 %v3650_v11, %v1389_v19  ;;  %v1710_v35 = vsub.f32 %v3571_v48, %v1621_v33 }
 0x3db   :  { %4324 = vst [vmem:[#allocation9_spill] sm:$0xff] %v3801_v13  ;;  %v2846_v59 = vpop.eup %2845  ;;  %v1748_v19 = vmul.f32 1.442695, %v1710_v35 }
 0x3dc   :  { %1836 = vrot.lane.b32.xlu0 %v2846_v59, %s3063_s23  ;;  %1644 = vrot.lane.b32.xlu2 %v3801_v13, %s3064_s24  ;;  %v2848_v5 = vpop.eup %2847  ;;  %v3813_v59 = vmax.f32 %v3670_v39, %v1393_v4 }
 0x3de   :  { %1838 = vrot.lane.b32.xlu1 %v2848_v5, %s3063_s23  ;;  %4326 = vst [vmem:[#allocation12_spill] sm:$0xff] %v3813_v59 }
 0x3e0   :  { %v1391_v61 = vpop.permute.xlu1 %1390  ;;  %v1617_v58 = vpop.permute.xlu0 %1616 }
 0x3e1   :  { %v3809_v51 = vmax.f32 %v3660_v28, %v1391_v61  ;;  %v1708_v15 = vsub.f32 %v3559_v20, %v1617_v58 }
 0x3e3   :  { %4325 = vst [vmem:[#allocation10_spill] sm:$0xff] %v3809_v51  ;;  %v1744_v44 = vmul.f32 1.442695, %v1708_v15 }
 0x3e4   :  { %1646 = vrot.lane.b32.xlu0 %v3809_v51, %s3064_s24 }
 0x3e5   :  { %2849 = vpow2.f32 %v1744_v44 }
 0x3e6   :  { %1648 = vrot.lane.b32.xlu1 %v3813_v59, %s3064_s24  ;;  %2851 = vpow2.f32 %v1748_v19 }
 0x3e8   :  { %v1619_v33 = vpop.permute.xlu1 %1618  ;;  %v1399_v5 = vpop.permute.xlu2 %1398 }
 0x3e9   :  { %v1709_v61 = vsub.f32 %v3564_v26, %v1619_v33  ;;  %v3827_v51 = vmax.f32 %v3700_v62, %v1399_v5 }
 0x3eb   :  { %v2850_v63 = vpop.eup %2849  ;;  %v1746_v34 = vmul.f32 1.442695, %v1709_v61  ;;  %4328 = vst [vmem:[#allocation19_spill] sm:$0xff] %v3827_v51 }
 0x3ec   :  { %1840 = vrot.lane.b32.xlu2 %v2850_v63, %s3063_s23  ;;  %v2852_v35 = vpop.eup %2851 }
 0x3ed   :  { %2853 = vpow2.f32 %v1746_v34 }
 0x3ee   :  { %1844 = vrot.lane.b32.xlu1 %v2852_v35, %s3063_s23 }
 0x3f0   :  { %v1395_v4 = vpop.permute.xlu0 %1394  ;;  %v1627_v58 = vpop.permute.xlu2 %1626 }
 0x3f1   :  { %v3823_v15 = vmax.f32 %v3680_v9, %v1395_v4  ;;  %v1713_v44 = vsub.f32 %v3587_v1, %v1627_v58 }
 0x3f3   :  { %4327 = vst [vmem:[#allocation14_spill] sm:$0xff] %v3823_v15  ;;  %v2854_v19 = vpop.eup %2853  ;;  %v1754_v59 = vmul.f32 1.442695, %v1713_v44 }
 0x3f4   :  { %1842 = vrot.lane.b32.xlu0 %v2854_v19, %s3063_s23  ;;  %1650 = vrot.lane.b32.xlu2 %v3823_v15, %s3064_s24 }
 0x3f5   :  { %2855 = vpow2.f32 %v1754_v59 }
 0x3f6   :  { %1654 = vrot.lane.b32.xlu1 %v3827_v51, %s3064_s24 }
 0x3f8   :  { %v1397_v34 = vpop.permute.xlu1 %1396  ;;  %v1623_v63 = vpop.permute.xlu0 %1622 }
 0x3f9   :  { %v3835_v33 = vmax.f32 %v3690_v2, %v1397_v34  ;;  %v1711_v61 = vsub.f32 %v3576_v3, %v1623_v63 }
 0x3fb   :  { %4329 = vst [vmem:[#allocation20_spill] sm:$0xff] %v3835_v33  ;;  %v1750_v35 = vmul.f32 1.442695, %v1711_v61  ;;  %v2856_v5 = vpop.eup %2855 }
 0x3fc   :  { %1652 = vrot.lane.b32.xlu0 %v3835_v33, %s3064_s24 }
 0x3fd   :  { %2857 = vpow2.f32 %v1750_v35 }
 0x3fe   :  { %1850 = vrot.lane.b32.xlu1 %v2856_v5, %s3063_s23 }
 0x400   :  { %v1625_v4 = vpop.permute.xlu1 %1624  ;;  %v1405_v58 = vpop.permute.xlu2 %1404 }
 0x401   :  { %v1712_v44 = vsub.f32 %v3582_v25, %v1625_v4  ;;  %v3843_v51 = vmax.f32 %v3730_v18, %v1405_v58 }
 0x403   :  { %v2858_v59 = vpop.eup %2857  ;;  %v1752_v19 = vmul.f32 1.442695, %v1712_v44  ;;  %4330 = vst [vmem:[#allocation21_spill] sm:$0xff] %v3843_v51 }
 0x404   :  { %1846 = vrot.lane.b32.xlu2 %v2858_v59, %s3063_s23 }
 0x405   :  { %2859 = vpow2.f32 %v1752_v19 }
 0x406   :  { %1660 = vrot.lane.b32.xlu1 %v3843_v51, %s3064_s24 }
 0x408   :  { %v1633_v34 = vpop.permute.xlu2 %1632  ;;  %v1401_v63 = vpop.permute.xlu0 %1400 }
 0x409   :  { %v1716_v61 = vsub.f32 %v3604_v45, %v1633_v34  ;;  %v3850_v35 = vmax.f32 %v3710_v56, %v1401_v63 }
 0x40b   :  { %4331 = vst [vmem:[#allocation22_spill] sm:$0xff] %v3850_v35  ;;  %v2860_v5 = vpop.eup %2859  ;;  %v1760_v4 = vmul.f32 1.442695, %v1716_v61 }
 0x40c   :  { %1848 = vrot.lane.b32.xlu0 %v2860_v5, %s3063_s23  ;;  %1656 = vrot.lane.b32.xlu2 %v3850_v35, %s3064_s24 }
 0x40d   :  { %2861 = vpow2.f32 %v1760_v4 }
 0x410   :  { %v1403_v58 = vpop.permute.xlu1 %1402  ;;  %v1629_v44 = vpop.permute.xlu0 %1628 }
 0x411   :  { %v3856_v59 = vmax.f32 %v3720_v22, %v1403_v58  ;;  %v1714_v19 = vsub.f32 %v3593_v23, %v1629_v44  ;;  %v3065_v44 = vmov 0  }
 0x412   :  { %2838 = vset.pattern.permute.xlu1 %v3065_v44  ;;  %2837 = vset.pattern.permute.xlu0 %v3065_v44 }
 0x413   :  { %4332 = vst [vmem:[#allocation23_spill] sm:$0xff] %v3856_v59  ;;  %v2862_v51 = vpop.eup %2861  ;;  %v1756_v34 = vmul.f32 1.442695, %v1714_v19  ;;  %2839 = vset.pattern.permute.xlu2 %v3065_v44 }
 0x414   :  { %1658 = vrot.lane.b32.xlu0 %v3856_v59, %s3064_s24  ;;  %1856 = vrot.lane.b32.xlu1 %v2862_v51, %s3063_s23  ;;  %v1481_v51 = vsub.f32 %v3539_v52, %v3633_v41 }
 0x415   :  { %2863 = vpow2.f32 %v1756_v34 }
 0x418   :  { %v1631_v63 = vpop.permute.xlu1 %1630  ;;  %v1411_v61 = vpop.permute.xlu2 %1410 }
 0x419   :  { %v1715_v5 = vsub.f32 %v3598_v27, %v1631_v63  ;;  %v3864_v4 = vmax.f32 %v3764_v24, %v1411_v61 }
 0x41b   :  { %4333 = vst [vmem:[#allocation24_spill] sm:$0xff] %v3864_v4  ;;  %v2864_v35 = vpop.eup %2863  ;;  %v1758_v58 = vmul.f32 1.442695, %v1715_v5 }
 0x41c   :  { %1852 = vrot.lane.b32.xlu2 %v2864_v35, %s3063_s23  ;;  %1666 = vrot.lane.b32.xlu1 %v3864_v4, %s3064_s24  ;;  %v1514_v35 = vmul.f32 1.442695, %v1481_v51 }
 0x41d   :  { %2865 = vpow2.f32 %v1758_v58 }
 0x420   :  { %v1407_v19 = vpop.permute.xlu0 %1406 }
 0x421   :  { %v1639_v34 = vpop.permute.xlu2 %1638  ;;  %v3872_v63 = vmax.f32 %v3740_v54, %v1407_v19 }
 0x422   :  { %v1719_v61 = vsub.f32 %v3620_v36, %v1639_v34  ;;  %v1480_v34 = vsub.f32 %v3534_v37, %v3623_v43 }
 0x423   :  { %4334 = vst [vmem:[#allocation25_spill] sm:$0xff] %v3872_v63  ;;  %v2866_v5 = vpop.eup %2865 }
 0x424   :  { %v1766_v59 = vmul.f32 1.442695, %v1719_v61  ;;  %1854 = vrot.lane.b32.xlu0 %v2866_v5, %s3063_s23  ;;  %1662 = vrot.lane.b32.xlu2 %v3872_v63, %s3064_s24  ;;  %v1512_v61 = vmul.f32 1.442695, %v1480_v34 }
 0x426   :  { %2867 = vpow2.f32 %v1766_v59 }
 0x427   :  { %2869 = vpow2.f32 %v1514_v35 }
 0x428   :  { %v1409_v58 = vpop.permute.xlu1 %1408  ;;  %v1635_v44 = vpop.permute.xlu0 %1634 }
 0x429   :  { %v3879_v4 = vmax.f32 %v3750_v21, %v1409_v58  ;;  %v1717_v19 = vsub.f32 %v3609_v17, %v1635_v44 }
 0x42b   :  { %4335 = vst [vmem:[#allocation26_spill] sm:$0xff] %v3879_v4  ;;  %v1762_v15 = vmul.f32 1.442695, %v1717_v19 }
 0x42c   :  { %v2868_v51 = vpop.eup %2867  ;;  %1664 = vrot.lane.b32.xlu0 %v3879_v4, %s3064_s24 }
 0x42d   :  { %2871 = vpow2.f32 %v1762_v15  ;;  %1862 = vrot.lane.b32.xlu1 %v2868_v51, %s3063_s23  ;;  %v2870_v59 = vpop.eup %2869 }
 0x42e   :  { %v1835_v5 = vpop.permute.xlu2 %1834 }
 0x42f   :  { %v1929_v35 = vadd.f32 %v2870_v59, %v1835_v5 }
 0x430   :  { %v1637_v63 = vpop.permute.xlu1 %1636 }
 0x431   :  { %2873 = vlog2.f32 %v1929_v35  ;;  %v1718_v58 = vsub.f32 %v3615_v6, %v1637_v63 }
 0x432   :  { %2875 = vpow2.f32 %v1512_v61 }
 0x433   :  { %v2872_v44 = vpop.eup %2871  ;;  %v1764_v33 = vmul.f32 1.442695, %v1718_v58 }
 0x434   :  { %1858 = vrot.lane.b32.xlu2 %v2872_v44, %s3063_s23 }
 0x435   :  { %2877 = vpow2.f32 %v1764_v33 }
 0x436   :  { %v1645_v19 = vpop.permute.xlu2 %1644 }
 0x437   :  { %v2874_v37 = vpop.eup %2873  ;;  %v1722_v15 = vsub.f32 %v3650_v11, %v1645_v19 }
 0x438   :  { %v2876_v4 = vpop.eup %2875  ;;  %v1963_v51 = vmul.f32 0.6931472, %v2874_v37  ;;  %v1833_v52 = vpop.permute.xlu1 %1832  ;;  %v1482_v37 = vsub.f32 %v3547_v14, %v3643_v32 }
 0x439   :  { %v1413_v34 = vpop.permute.xlu0 %1412  ;;  %v1928_v13 = vadd.f32 %v2876_v4, %v1833_v52  ;;  %v1772_v59 = vmul.f32 1.442695, %v1722_v15 }
 0x43a   :  { %v3891_v5 = vmax.f32 %v3771_v49, %v1413_v34  ;;  %v2025_v63 = vadd.f32 %v1963_v51, %v3633_v41  ;;  %v1516_v19 = vmul.f32 1.442695, %v1482_v37  ;;  %v1484_v34 = vsub.f32 %v3559_v20, %v3663_v8 }
 0x43b   :  { %v2878_v61 = vpop.eup %2877  ;;  %2879 = vlog2.f32 %v1928_v13  ;;  %v1483_v13 = vsub.f32 %v3552_v46, %v3653_v29 }
 0x43c   :  { %4336 = vst [vmem:[#allocation27_spill] sm:$0xff] %v3891_v5  ;;  %1860 = vrot.lane.b32.xlu0 %v2878_v61, %s3063_s23  ;;  %2063 = vperm.xlu1 %2838, %v2025_v63   ;;  %2881 = vpow2.f32 %v1772_v59 }
 0x43d   :  { %1668 = vrot.lane.b32.xlu2 %v3891_v5, %s3064_s24  ;;  %v1518_v15 = vmul.f32 1.442695, %v1483_v13 }
 0x440   :  { %v1415_v33 = vpop.permute.xlu1 %1414 }
 0x441   :  { %v1641_v52 = vpop.permute.xlu0 %1640  ;;  %v3900_v4 = vmax.f32 %v3786_v55, %v1415_v33  ;;  %v2880_v41 = vpop.eup %2879 }
 0x442   :  { %v1720_v35 = vsub.f32 %v3630_v60, %v1641_v52  ;;  %v2882_v58 = vpop.eup %2881  ;;  %v1961_v51 = vmul.f32 0.6931472, %v2880_v41 }
 0x443   :  { %4337 = vst [vmem:[#allocation28_spill] sm:$0xff] %v3900_v4 }
 0x444   :  { %v1768_v44 = vmul.f32 1.442695, %v1720_v35  ;;  %1670 = vrot.lane.b32.xlu0 %v3900_v4, %s3064_s24  ;;  %1868 = vrot.lane.b32.xlu1 %v2882_v58, %s3063_s23  ;;  %v2024_v33 = vadd.f32 %v1961_v51, %v3623_v43  ;;  %v1520_v35 = vmul.f32 1.442695, %v1484_v34 }
 0x446   :  { %2883 = vpow2.f32 %v1768_v44  ;;  %v1841_v61 = vpop.permute.xlu2 %1840 }
 0x447   :  { %2885 = vpow2.f32 %v1516_v19 }
 0x448   :  { %v1643_v59 = vpop.permute.xlu1 %1642  ;;  %2887 = vpow2.f32 %v1518_v15  ;;  %v1486_v15 = vsub.f32 %v3571_v48, %v3683_v53 }
 0x449   :  { %v1721_v63 = vsub.f32 %v3640_v40, %v1643_v59 }
 0x44a   :  { %v1524_v34 = vmul.f32 1.442695, %v1486_v15 }
 0x44b   :  { %v1770_v52 = vmul.f32 1.442695, %v1721_v63 }
 0x44c   :  { %v2884_v37 = vpop.eup %2883  ;;  %2058 = vperm.xlu0 %2837, %v2024_v33  }
 0x44d   :  { %1864 = vrot.lane.b32.xlu2 %v2884_v37, %s3063_s23  ;;  %2889 = vpow2.f32 %v1770_v52  ;;  %v2886_v13 = vpop.eup %2885 }
 0x44e   :  { %v1837_v41 = vpop.permute.xlu0 %1836  ;;  %v2888_v44 = vpop.eup %2887  ;;  %2891 = vpow2.f32 %v1520_v35 }
 0x44f   :  { %v1930_v58 = vadd.f32 %v2886_v13, %v1837_v41  ;;  %v1651_v43 = vpop.permute.xlu2 %1650  ;;  %v1485_v13 = vsub.f32 %v3564_v26, %v3673_v47 }
 0x450   :  { %v1839_v19 = vpop.permute.xlu1 %1838  ;;  %v1725_v52 = vsub.f32 %v3680_v9, %v1651_v43 }
 0x451   :  { %2893 = vlog2.f32 %v1930_v58  ;;  %v1931_v4 = vadd.f32 %v2888_v44, %v1839_v19 }
 0x452   :  { %v1778_v5 = vmul.f32 1.442695, %v1725_v52  ;;  %v1489_v52 = vsub.f32 %v3587_v1, %v3713_v42 }
 0x453   :  { %v2890_v59 = vpop.eup %2889  ;;  %2895 = vlog2.f32 %v1931_v4 }
 0x454   :  { %1866 = vrot.lane.b32.xlu0 %v2890_v59, %s3063_s23  ;;  %v2892_v51 = vpop.eup %2891  ;;  %2897 = vpow2.f32 %v1524_v34 }
 0x455   :  { %v1932_v37 = vadd.f32 %v2892_v51, %v1841_v61  ;;  %v1522_v51 = vmul.f32 1.442695, %v1485_v13 }
 0x456   :  { %v1647_v63 = vpop.permute.xlu0 %1646 }
 0x457   :  { %v2894_v33 = vpop.eup %2893  ;;  %v1723_v35 = vsub.f32 %v3660_v28, %v1647_v63  ;;  %2899 = vlog2.f32 %v1932_v37 }
 0x458   :  { %v1965_v41 = vmul.f32 0.6931472, %v2894_v33  ;;  %v1649_v58 = vpop.permute.xlu1 %1648  ;;  %v1487_v33 = vsub.f32 %v3576_v3, %v3693_v50 }
 0x459   :  { %v2896_v44 = vpop.eup %2895  ;;  %v1774_v19 = vmul.f32 1.442695, %v1723_v35  ;;  %v1724_v4 = vsub.f32 %v3670_v39, %v1649_v58 }
 0x45a   :  { %v1967_v59 = vmul.f32 0.6931472, %v2896_v44  ;;  %v2026_v15 = vadd.f32 %v1965_v41, %v3643_v32  ;;  %v2898_v35 = vpop.eup %2897  ;;  %v1526_v41 = vmul.f32 1.442695, %v1487_v33 }
 0x45b   :  { %v1776_v61 = vmul.f32 1.442695, %v1724_v4  ;;  %2901 = vpow2.f32 %v1774_v19  ;;  %v1530_v19 = vmul.f32 1.442695, %v1489_v52 }
 0x45c   :  { %2068 = vperm.xlu2 %2839, %v2026_v15   ;;  %v2027_v43 = vadd.f32 %v1967_v59, %v3653_v29 }
 0x45d   :  { %2903 = vpow2.f32 %v1776_v61  ;;  %v2900_v58 = vpop.eup %2899 }
 0x45e   :  { %2073 = vperm.xlu1 %2838, %v2027_v43   ;;  %v1847_v63 = vpop.permute.xlu2 %1846  ;;  %2905 = vpow2.f32 %v1778_v5  ;;  %v1969_v5 = vmul.f32 0.6931472, %v2900_v58 }
 0x45f   :  { %2907 = vpow2.f32 %v1522_v51 }
 0x460   :  { %v1845_v34 = vpop.permute.xlu1 %1844 }
 0x461   :  { %v1934_v32 = vadd.f32 %v2898_v35, %v1845_v34  ;;  %v2902_v37 = vpop.eup %2901  ;;  %v2028_v35 = vadd.f32 %v1969_v5, %v3663_v8 }
 0x463   :  { %v2904_v13 = vpop.eup %2903  ;;  %2909 = vlog2.f32 %v1934_v32 }
 0x464   :  { %1872 = vrot.lane.b32.xlu0 %v2904_v13, %s3063_s23  ;;  %1870 = vrot.lane.b32.xlu2 %v2902_v37, %s3063_s23  ;;  %v2906_v29 = vpop.eup %2905  ;;  %2911 = vpow2.f32 %v1526_v41 }
 0x465   :  { %v2908_v44 = vpop.eup %2907 }
 0x466   :  { %1874 = vrot.lane.b32.xlu1 %v2906_v29, %s3063_s23  ;;  %v1843_v4 = vpop.permute.xlu0 %1842  ;;  %v1657_v59 = vpop.permute.xlu2 %1656 }
 0x467   :  { %v1933_v15 = vadd.f32 %v2908_v44, %v1843_v4  ;;  %v1728_v61 = vsub.f32 %v3710_v56, %v1657_v59 }
 0x468   :  { %v1655_v51 = vpop.permute.xlu1 %1654 }
 0x469   :  { %v2910_v43 = vpop.eup %2909  ;;  %2913 = vlog2.f32 %v1933_v15  ;;  %v1784_v34 = vmul.f32 1.442695, %v1728_v61  ;;  %v1727_v37 = vsub.f32 %v3700_v62, %v1655_v51 }
 0x46a   :  { %2915 = vpow2.f32 %v1530_v19  ;;  %v1973_v33 = vmul.f32 0.6931472, %v2910_v43  ;;  %v2912_v58 = vpop.eup %2911  ;;  %v1488_v19 = vsub.f32 %v3582_v25, %v3703_v30  ;;  %v998_v43 = vpop.f32.mrf.mxu1 }
 0x46b   :  { %v1935_v52 = vadd.f32 %v2912_v58, %v1847_v63  ;;  %2917 = vpow2.f32 %v1784_v34  ;;  %v1782_v5 = vmul.f32 1.442695, %v1727_v37  ;;  %v909_v63 = vpop.f32.mrf.mxu0 }
 0x46c   :  { %2078 = vperm.xlu2 %2839, %v2028_v35   ;;  %v2030_v32 = vadd.f32 %v1973_v33, %v3683_v53  ;;  %v1528_v61 = vmul.f32 1.442695, %v1488_v19  ;;  %v1490_v35 = vsub.f32 %v3593_v23, %v3723_v57 }
 0x46d   :  { %2919 = vlog2.f32 %v1935_v52 }
 0x46e   :  { %2088 = vperm.xlu1 %2838, %v2030_v32   ;;  %v1653_v13 = vpop.permute.xlu0 %1652 }
 0x46f   :  { %v2914_v41 = vpop.eup %2913  ;;  %v1726_v29 = vsub.f32 %v3690_v2, %v1653_v13  ;;  %v1532_v13 = vmul.f32 1.442695, %v1490_v35 }
 0x470   :  { %v2916_v44 = vpop.eup %2915  ;;  %v1971_v4 = vmul.f32 0.6931472, %v2914_v41  ;;  %v1851_v8 = vpop.permute.xlu1 %1850 }
 0x471   :  { %v1780_v59 = vmul.f32 1.442695, %v1726_v29  ;;  %v1937_v15 = vadd.f32 %v2916_v44, %v1851_v8  ;;  %v2918_v51 = vpop.eup %2917 }
 0x472   :  { %v2029_v53 = vadd.f32 %v1971_v4, %v3673_v47  ;;  %v3033_v47 = vld [vmem:[%s4213_s4] sm:$0x3] }
 0x473   :  { %2921 = vpow2.f32 %v1780_v59  ;;  %v2920_v34 = vpop.eup %2919  ;;  %v3945_v37 = vperm.slane %v3033_v47, 0  ;;  %v911_v29 = vpop.f32.mrf.mxu0  ;;  %968 = vmatmul.bf16.gmra.mxu0 %v4305_v0 }
 0x474   :  { %2923 = vlog2.f32 %v1937_v15  ;;  %2083 = vperm.xlu0 %2837, %v2029_v53   ;;  %v1975_v44 = vmul.f32 0.6931472, %v2920_v34  ;;  %v1000_v59 = vpop.f32.mrf.mxu1  ;;  %1057 = vmatmul.bf16.gmra.mxu1 %v4316_v12 }
 0x475   :  { %2925 = vpow2.f32 %v1782_v5  ;;  %v910_v19 = vadd.f32 %v909_v63, %v3945_v37  ;;  %v912_v4 = vadd.f32 %v911_v29, %v3945_v37 }
 0x476   :  { %1880 = vrot.lane.b32.xlu1 %v2918_v51, %s3063_s23  ;;  %v1853_v33 = vpop.permute.xlu2 %1852  ;;  %2927 = vpow2.f32 %v1528_v61  ;;  %v2031_v63 = vadd.f32 %v1975_v44, %v3693_v50  ;;  %v1491_v50 = vsub.f32 %v3598_v27, %v3733_v31 }
 0x477   :  { %v999_v51 = vadd.f32 %v998_v43, %v910_v19  ;;  %v1001_v35 = vadd.f32 %v1000_v59, %v912_v4  ;;  %2929 = vpow2.f32 %v1532_v13  ;;  %v1492_v19 = vsub.f32 %v3604_v45, %v3743_v38 }
 0x478   :  { %v1661_v8 = vpop.permute.xlu1 %1660 }
 0x479   :  { %v2922_v32 = vpop.eup %2921  ;;  %v1730_v43 = vsub.f32 %v3730_v18, %v1661_v8  ;;  %v1534_v8 = vmul.f32 1.442695, %v1491_v50 }
 0x47a   :  { %v2924_v58 = vpop.eup %2923  ;;  %1876 = vrot.lane.b32.xlu2 %v2922_v32, %s3063_s23  ;;  %v2644_v32 = vpack.c.bf16 %v1001_v35, %v999_v51 }
 0x47b   :  { %v2926_v52 = vpop.eup %2925  ;;  %v1979_v41 = vmul.f32 0.6931472, %v2924_v58  ;;  %v914_v12 = vpop.f32.mrf.mxu0  ;;  %v1788_v59 = vmul.f32 1.442695, %v1730_v43 }
 0x47c   :  { %1878 = vrot.lane.b32.xlu0 %v2926_v52, %s3063_s23  ;;  %v2928_v15 = vpop.eup %2927  ;;  %2645 = vst [vmem:[%s4214_s5] sm:$0xff] %v2644_v32   ;;  %v1003_v47 = vpop.f32.mrf.mxu1  ;;  %v915_v51 = vadd.f32 %v914_v12, %v3945_v37 }
 0x47d   :  { %v2033_v5 = vadd.f32 %v1979_v41, %v3713_v42  ;;  %v2930_v42 = vpop.eup %2929 }
 0x47e   :  { %v1663_v53 = vpop.permute.xlu2 %1662  ;;  %v1849_v61 = vpop.permute.xlu0 %1848  ;;  %v1938_v52 = vadd.f32 %v2930_v42, %v1853_v33  ;;  %v1004_v32 = vadd.f32 %v1003_v47, %v915_v51 }
 0x47f   :  { %2103 = vperm.xlu1 %2838, %v2033_v5   ;;  %v1731_v0 = vsub.f32 %v3740_v54, %v1663_v53  ;;  %v1936_v34 = vadd.f32 %v2928_v15, %v1849_v61  ;;  %v1536_v61 = vmul.f32 1.442695, %v1492_v19 }
 0x481   :  { %v1790_v58 = vmul.f32 1.442695, %v1731_v0  ;;  %2931 = vlog2.f32 %v1936_v34 }
 0x482   :  { %2093 = vperm.xlu2 %2839, %v2031_v63  }
 0x483   :  { %2933 = vpow2.f32 %v1790_v58  ;;  %v916_v53 = vpop.f32.mrf.mxu0  ;;  %973 = vmatmul.bf16.gmra.mxu0 %v4307_v7  ;;  %v1495_v7 = vsub.f32 %v3620_v36, %v3774_v10 }
 0x484   :  { %2935 = vlog2.f32 %v1938_v52  ;;  %v917_v35 = vadd.f32 %v916_v53, %v3945_v37  ;;  %v1005_v0 = vpop.f32.mrf.mxu1  ;;  %1062 = vmatmul.bf16.gmra.mxu1 %v4317_v16 }
 0x486   :  { %v1857_v13 = vpop.permute.xlu1 %1856  ;;  %v1659_v41 = vpop.permute.xlu0 %1658 }
 0x487   :  { %v2932_v29 = vpop.eup %2931  ;;  %v1729_v44 = vsub.f32 %v3720_v22, %v1659_v41  ;;  %v1542_v41 = vmul.f32 1.442695, %v1495_v7 }
 0x488   :  { %v1977_v4 = vmul.f32 0.6931472, %v2932_v29 }
 0x489   :  { %v2934_v5 = vpop.eup %2933  ;;  %v1786_v15 = vmul.f32 1.442695, %v1729_v44 }
 0x48a   :  { %1886 = vrot.lane.b32.xlu1 %v2934_v5, %s3063_s23  ;;  %v2032_v33 = vadd.f32 %v1977_v4, %v3703_v30  ;;  %v1006_v30 = vadd.f32 %v1005_v0, %v917_v35  ;;  %v2936_v42 = vpop.eup %2935  ;;  %v4338_v35 = vld [vmem:[#allocation15_spill] sm:$0xff] }
 0x48b   :  { %2937 = vpow2.f32 %v1786_v15  ;;  %v919_v47 = vpop.f32.mrf.mxu0  ;;  %v1981_v29 = vmul.f32 0.6931472, %v2936_v42 }
 0x48c   :  { %2098 = vperm.xlu0 %2837, %v2032_v33   ;;  %2939 = vpow2.f32 %v1788_v59  ;;  %v2649_v12 = vpack.c.bf16 %v1006_v30, %v1004_v32  ;;  %v1008_v44 = vpop.f32.mrf.mxu1  ;;  %v4339_v32 = vld [vmem:[#allocation16_spill] sm:$0xff] }
 0x48d   :  { %2941 = vpow2.f32 %v1534_v8  ;;  %v2034_v8 = vadd.f32 %v1981_v29, %v3723_v57 }
 0x48e   :  { %v3970_v34 = vpop.permute.xlu2 %1858  ;;  %v1667_v63 = vpop.permute.xlu1 %1666  ;;  %2943 = vpow2.f32 %v1536_v61  ;;  %2801 = vst [vmem:[%s4214_s5 + $0x8] sm:$0xff] %v2649_v12  }
 0x48f   :  { %v1733_v58 = vsub.f32 %v3764_v24, %v1667_v63 }
 0x491   :  { %v2938_v43 = vpop.eup %2937  ;;  %v1794_v52 = vmul.f32 1.442695, %v1733_v58 }
 0x492   :  { %1882 = vrot.lane.b32.xlu2 %v2938_v43, %s3063_s23  ;;  %v2940_v16 = vpop.eup %2939 }
 0x493   :  { %v2942_v50 = vpop.eup %2941  ;;  %2945 = vpow2.f32 %v1794_v52  ;;  %v921_v51 = vpop.f32.mrf.mxu0  ;;  %978 = vmatmul.bf16.gmra.mxu0 %v4338_v35  ;;  %v4340_v52 = vld [vmem:[#allocation13_spill] sm:$0xff] }
 0x494   :  { %1884 = vrot.lane.b32.xlu0 %v2940_v16, %s3063_s23  ;;  %v2944_v19 = vpop.eup %2943  ;;  %2947 = vpow2.f32 %v1542_v41  ;;  %v922_v0 = vadd.f32 %v921_v51, %v3945_v37  ;;  %v1010_v63 = vpop.f32.mrf.mxu1  ;;  %1067 = vmatmul.bf16.gmra.mxu1 %v4339_v32  ;;  %v1494_v16 = vsub.f32 %v3615_v6, %v4340_v52  ;;  %v4343_v32 = vld [vmem:[#allocation17_spill] sm:$0xff] }
 0x495   :  { %v1940_v5 = vadd.f32 %v2944_v19, %v1857_v13  ;;  %v920_v13 = vadd.f32 %v919_v47, %v3945_v37 }
 0x496   :  { %v1855_v4 = vpop.permute.xlu0 %1854  ;;  %v1011_v42 = vadd.f32 %v1010_v63, %v922_v0 }
 0x497   :  { %v1669_v59 = vpop.permute.xlu2 %1668  ;;  %v1939_v15 = vadd.f32 %v2942_v50, %v1855_v4  ;;  %v1009_v58 = vadd.f32 %v1008_v44, %v920_v13 }
 0x498   :  { %v1734_v33 = vsub.f32 %v3771_v49, %v1669_v59  ;;  %v1540_v59 = vmul.f32 1.442695, %v1494_v16 }
 0x499   :  { %2949 = vlog2.f32 %v1939_v15  ;;  %v2946_v61 = vpop.eup %2945  ;;  %v2654_v50 = vpack.c.bf16 %v1011_v42, %v1009_v58 }
 0x49a   :  { %v1796_v53 = vmul.f32 1.442695, %v1734_v33  ;;  %2108 = vperm.xlu2 %2839, %v2034_v8   ;;  %2951 = vlog2.f32 %v1940_v5  ;;  %v2948_v30 = vpop.eup %2947  ;;  %v4341_v8 = vld [vmem:[#allocation6_spill] sm:$0xff] }
 0x49b   :  { %2802 = vst [vmem:[%s4214_s5 + $0x10] sm:$0xff] %v2654_v50   ;;  %v924_v44 = vpop.f32.mrf.mxu0 }
 0x49c   :  { %2953 = vpow2.f32 %v1796_v53  ;;  %1890 = vrot.lane.b32.xlu0 %v2946_v61, %s3063_s23  ;;  %v1013_v33 = vpop.f32.mrf.mxu1  ;;  %v1493_v53 = vsub.f32 %v3609_v17, %v4341_v8  ;;  %v4342_v61 = vld [vmem:[#allocation9_spill] sm:$0xff] }
 0x49e   :  { %v1665_v57 = vpop.permute.xlu0 %1664  ;;  %v1538_v0 = vmul.f32 1.442695, %v1493_v53 }
 0x49f   :  { %v2950_v7 = vpop.eup %2949  ;;  %v1863_v12 = vpop.permute.xlu1 %1862  ;;  %v1732_v43 = vsub.f32 %v3750_v21, %v1665_v57  ;;  %v925_v57 = vadd.f32 %v924_v44, %v3945_v37 }
 0x4a0   :  { %v1983_v41 = vmul.f32 0.6931472, %v2950_v7  ;;  %v1943_v29 = vadd.f32 %v2948_v30, %v1863_v12  ;;  %v2952_v47 = vpop.eup %2951  ;;  %v4344_v12 = vld [vmem:[#allocation18_spill] sm:$0xff] }
 0x4a1   :  { %v1792_v19 = vmul.f32 1.442695, %v1732_v43  ;;  %v1985_v15 = vmul.f32 0.6931472, %v2952_v47  ;;  %v4345_v47 = vld [vmem:[#allocation7_spill] sm:$0xff] }
 0x4a2   :  { %v2954_v4 = vpop.eup %2953  ;;  %v2035_v5 = vadd.f32 %v1983_v41, %v3733_v31  ;;  %v1498_v31 = vsub.f32 %v3650_v11, %v4342_v61  ;;  %v1014_v41 = vadd.f32 %v1013_v33, %v925_v57 }
 0x4a3   :  { %2955 = vpow2.f32 %v1792_v19  ;;  %1892 = vrot.lane.b32.xlu1 %v2954_v4, %s3063_s23  ;;  %v2036_v35 = vadd.f32 %v1985_v15, %v3743_v38  ;;  %v926_v63 = vpop.f32.mrf.mxu0  ;;  %983 = vmatmul.bf16.gmra.mxu0 %v4343_v32  ;;  %v1496_v19 = vsub.f32 %v3630_v60, %v4345_v47 }
 0x4a4   :  { %2957 = vlog2.f32 %v1943_v29  ;;  %2113 = vperm.xlu0 %2837, %v2035_v5   ;;  %v1548_v30 = vmul.f32 1.442695, %v1498_v31  ;;  %v927_v58 = vadd.f32 %v926_v63, %v3945_v37  ;;  %v1015_v7 = vpop.f32.mrf.mxu1  ;;  %1072 = vmatmul.bf16.gmra.mxu1 %v4344_v12 }
 0x4a5   :  { %2959 = vpow2.f32 %v1540_v59  ;;  %v1544_v15 = vmul.f32 1.442695, %v1496_v19 }
 0x4a6   :  { %v1016_v29 = vadd.f32 %v1015_v7, %v927_v58  ;;  %2961 = vpow2.f32 %v1538_v0 }
 0x4a7   :  { %2963 = vpow2.f32 %v1548_v30  ;;  %v1865_v4 = vpop.permute.xlu2 %1864 }
 0x4a8   :  { %v2659_v5 = vpack.c.bf16 %v1016_v29, %v1014_v41 }
 0x4a9   :  { %v2956_v51 = vpop.eup %2955 }
 0x4aa   :  { %v2958_v13 = vpop.eup %2957  ;;  %1888 = vrot.lane.b32.xlu2 %v2956_v51, %s3063_s23  ;;  %2803 = vst [vmem:[%s4214_s5 + $0x18] sm:$0xff] %v2659_v5  }
 0x4ab   :  { %2118 = vperm.xlu1 %2838, %v2036_v35   ;;  %v1991_v42 = vmul.f32 0.6931472, %v2958_v13  ;;  %v2960_v43 = vpop.eup %2959  ;;  %v929_v59 = vpop.f32.mrf.mxu0  ;;  %v4346_v13 = vld [vmem:[#allocation8_spill] sm:$0xff] }
 0x4ac   :  { %v2962_v33 = vpop.eup %2961  ;;  %v1018_v53 = vpop.f32.mrf.mxu1  ;;  %v1497_v0 = vsub.f32 %v3640_v40, %v4346_v13 }
 0x4ad   :  { %v2039_v44 = vadd.f32 %v1991_v42, %v3774_v10  ;;  %v2964_v31 = vpop.eup %2963  ;;  %v1941_v63 = vadd.f32 %v2962_v33, %v3970_v34  ;;  %v4347_v42 = vld [vmem:[#allocation10_spill] sm:$0xff]  ;;  %v930_v34 = vadd.f32 %v929_v59, %v3945_v37 }
 0x4ae   :  { %v2064_v16 = vpop.permute.xlu1 %2063  ;;  %v1861_v38 = vpop.permute.xlu0 %1860  ;;  %v1499_v7 = vsub.f32 %v3660_v28, %v4347_v42 }
 0x4af   :  { %v1942_v50 = vadd.f32 %v2960_v43, %v1861_v38  ;;  %v1546_v38 = vmul.f32 1.442695, %v1497_v0 }
 0x4b1   :  { %2965 = vlog2.f32 %v1942_v50  ;;  %v1550_v50 = vmul.f32 1.442695, %v1499_v7 }
 0x4b2   :  { %2967 = vpow2.f32 %v1544_v15 }
 0x4b3   :  { %2133 = vperm.xlu1 %2838, %v2039_v44   ;;  %v931_v41 = vpop.f32.mrf.mxu0  ;;  %v1019_v44 = vadd.f32 %v1018_v53, %v930_v34 }
 0x4b4   :  { %v932_v29 = vadd.f32 %v931_v41, %v3945_v37  ;;  %v1020_v19 = vpop.f32.mrf.mxu1 }
 0x4b6   :  { %v1869_v51 = vpop.permute.xlu1 %1868  ;;  %v1671_v30 = vpop.permute.xlu0 %1670  ;;  %v1021_v15 = vadd.f32 %v1020_v19, %v932_v29  ;;  %v4351_v29 = vld [vmem:[#allocation12_spill] sm:$0xff] }
 0x4b7   :  { %v2966_v35 = vpop.eup %2965  ;;  %v1946_v32 = vadd.f32 %v2964_v31, %v1869_v51  ;;  %v4014_v57 = vpop.permute.xlu2 %2068  ;;  %v1735_v58 = vsub.f32 %v3786_v55, %v1671_v30 }
 0x4b8   :  { %v1989_v10 = vmul.f32 0.6931472, %v2966_v35  ;;  %v2968_v5 = vpop.eup %2967  ;;  %v4348_v35 = vld [vmem:[#allocation11_spill] sm:$0xff]  ;;  %v2664_v30 = vpack.c.bf16 %v1021_v15, %v1019_v44 }
 0x4b9   :  { %2969 = vlog2.f32 %v1946_v32  ;;  %v1798_v12 = vmul.f32 1.442695, %v1735_v58  ;;  %v1944_v31 = vadd.f32 %v2968_v5, %v1865_v4 }
 0x4ba   :  { %v2038_v43 = vadd.f32 %v1989_v10, %v4340_v52  ;;  %2971 = vlog2.f32 %v1941_v63  ;;  %v2217_v52 = vsub.f32 %v4348_v35, %v2064_v16  ;;  %v4349_v63 = vld [vmem:[#allocation5_spill] sm:$0xff]  ;;  %2804 = vst [vmem:[%s4214_s5 + $0x20] sm:$0xff] %v2664_v30  }
 0x4bb   :  { %2973 = vpow2.f32 %v1798_v12  ;;  %v934_v4 = vpop.f32.mrf.mxu0 }
 0x4bc   :  { %2128 = vperm.xlu0 %2837, %v2038_v43   ;;  %2975 = vpow2.f32 %v1546_v38  ;;  %v1023_v43 = vpop.f32.mrf.mxu1  ;;  %v4350_v38 = vld [vmem:[#allocation20_spill] sm:$0xff] }
 0x4bd   :  { %2977 = vpow2.f32 %v1550_v50  ;;  %v1502_v41 = vsub.f32 %v3690_v2, %v4350_v38  ;;  %v1500_v50 = vsub.f32 %v3670_v39, %v4351_v29 }
 0x4be   :  { %v2059_v51 = vpop.permute.xlu0 %2058  ;;  %2979 = vlog2.f32 %v1944_v31 }
 0x4bf   :  { %v2970_v33 = vpop.eup %2969  ;;  %v2216_v32 = vsub.f32 %v4349_v63, %v2059_v51  ;;  %v1871_v58 = vpop.permute.xlu2 %1870  ;;  %v1556_v51 = vmul.f32 1.442695, %v1502_v41  ;;  %v935_v63 = vadd.f32 %v934_v4, %v3945_v37 }
 0x4c0   :  { %v1997_v0 = vmul.f32 0.6931472, %v2970_v33  ;;  %v2972_v10 = vpop.eup %2971  ;;  %v4352_v33 = vld [vmem:[#allocation14_spill] sm:$0xff] }
 0x4c1   :  { %v2974_v59 = vpop.eup %2973  ;;  %v2724_v12 = vpack.c.bf16 %v2217_v52, %v2216_v32  ;;  %v1987_v53 = vmul.f32 0.6931472, %v2972_v10  ;;  %v1501_v31 = vsub.f32 %v3680_v9, %v4352_v33  ;;  %v1552_v52 = vmul.f32 1.442695, %v1500_v50 }
 0x4c2   :  { %v2042_v7 = vadd.f32 %v1997_v0, %v4342_v61  ;;  %1894 = vrot.lane.b32.xlu2 %v2974_v59, %s3063_s23  ;;  %v2976_v16 = vpop.eup %2975 }
 0x4c3   :  { %2725 = vst [vmem:[%s4215_s6] sm:$0xff] %v2724_v12   ;;  %v2978_v61 = vpop.eup %2977  ;;  %v2037_v44 = vadd.f32 %v1987_v53, %v4341_v8  ;;  %v936_v35 = vpop.f32.mrf.mxu0  ;;  %v1554_v59 = vmul.f32 1.442695, %v1501_v31  ;;  %v1024_v8 = vadd.f32 %v1023_v43, %v935_v63  ;;  %v2218_v53 = vsub.f32 %v3547_v14, %v4014_v57 }
 0x4c4   :  { %2148 = vperm.xlu1 %2838, %v2042_v7   ;;  %v1947_v19 = vadd.f32 %v2978_v61, %v1871_v58  ;;  %v2980_v15 = vpop.eup %2979  ;;  %v937_v32 = vadd.f32 %v936_v35, %v3945_v37  ;;  %v1025_v10 = vpop.f32.mrf.mxu1 }
 0x4c5   :  { %v1993_v30 = vmul.f32 0.6931472, %v2980_v15 }
 0x4c6   :  { %v1867_v34 = vpop.permute.xlu0 %1866  ;;  %v1026_v58 = vadd.f32 %v1025_v10, %v937_v32 }
 0x4c7   :  { %v1945_v5 = vadd.f32 %v2976_v16, %v1867_v34  ;;  %v4039_v0 = vpop.permute.xlu2 %2078  ;;  %v2040_v4 = vadd.f32 %v1993_v30, %v4345_v47 }
 0x4c8   :  { %v2669_v16 = vpack.c.bf16 %v1026_v58, %v1024_v8 }
 0x4c9   :  { %2981 = vlog2.f32 %v1945_v5 }
 0x4ca   :  { %2123 = vperm.xlu2 %2839, %v2037_v44   ;;  %2983 = vlog2.f32 %v1947_v19  ;;  %2805 = vst [vmem:[%s4214_s5 + $0x28] sm:$0xff] %v2669_v16  }
 0x4cb   :  { %2985 = vpow2.f32 %v1556_v51  ;;  %v939_v19 = vpop.f32.mrf.mxu0 }
 0x4cc   :  { %2987 = vpow2.f32 %v1552_v52  ;;  %v4353_v52 = vld [vmem:[#allocation22_spill] sm:$0xff]  ;;  %v940_v10 = vadd.f32 %v939_v19, %v3945_v37 }
 0x4cd   :  { %2989 = vpow2.f32 %v1554_v59 }
 0x4cf   :  { %v2982_v12 = vpop.eup %2981 }
 0x4d0   :  { %v2074_v7 = vpop.permute.xlu1 %2073  ;;  %v1995_v41 = vmul.f32 0.6931472, %v2982_v12  ;;  %v2984_v34 = vpop.eup %2983 }
 0x4d1   :  { %v2219_v61 = vsub.f32 %v3552_v46, %v2074_v7  ;;  %v2986_v5 = vpop.eup %2985  ;;  %v1999_v15 = vmul.f32 0.6931472, %v2984_v34  ;;  %v1028_v46 = vpop.f32.mrf.mxu1  ;;  %v4354_v7 = vld [vmem:[#allocation23_spill] sm:$0xff] }
 0x4d2   :  { %2138 = vperm.xlu2 %2839, %v2040_v4   ;;  %v2041_v50 = vadd.f32 %v1995_v41, %v4346_v13  ;;  %v2988_v47 = vpop.eup %2987  ;;  %v1504_v13 = vsub.f32 %v3710_v56, %v4353_v52  ;;  %v1505_v16 = vsub.f32 %v3720_v22, %v4354_v7 }
 0x4d3   :  { %v2729_v43 = vpack.c.bf16 %v2219_v61, %v2218_v53  ;;  %v2990_v51 = vpop.eup %2989  ;;  %v2043_v32 = vadd.f32 %v1999_v15, %v4347_v42  ;;  %v941_v30 = vpop.f32.mrf.mxu0  ;;  %v1029_v61 = vadd.f32 %v1028_v46, %v940_v10 }
 0x4d4   :  { %v1877_v44 = vpop.permute.xlu2 %1876  ;;  %2143 = vperm.xlu0 %2837, %v2041_v50   ;;  %v942_v59 = vadd.f32 %v941_v30, %v3945_v37  ;;  %v1560_v58 = vmul.f32 1.442695, %v1504_v13 }
 0x4d5   :  { %2816 = vst [vmem:[%s4215_s6 + $0x8] sm:$0xff] %v2729_v43   ;;  %v1950_v14 = vadd.f32 %v2986_v5, %v1877_v44  ;;  %v4355_v43 = vld [vmem:[#allocation19_spill] sm:$0xff] }
 0x4d6   :  { %v1873_v57 = vpop.permute.xlu0 %1872  ;;  %v1503_v42 = vsub.f32 %v3700_v62, %v4355_v43 }
 0x4d7   :  { %2991 = vlog2.f32 %v1950_v14  ;;  %v1948_v31 = vadd.f32 %v2988_v47, %v1873_v57  ;;  %v1562_v57 = vmul.f32 1.442695, %v1505_v16 }
 0x4d8   :  { %v1875_v35 = vpop.permute.xlu1 %1874  ;;  %v1558_v13 = vmul.f32 1.442695, %v1503_v42 }
 0x4d9   :  { %2993 = vlog2.f32 %v1948_v31  ;;  %v1949_v63 = vadd.f32 %v2990_v51, %v1875_v35  ;;  %v1030_v12 = vpop.f32.mrf.mxu1 }
 0x4da   :  { %2153 = vperm.xlu2 %2839, %v2043_v32   ;;  %v1031_v4 = vadd.f32 %v1030_v12, %v942_v59 }
 0x4db   :  { %2995 = vlog2.f32 %v1949_v63  ;;  %v944_v35 = vpop.f32.mrf.mxu0 }
 0x4dc   :  { %v2094_v41 = vpop.permute.xlu2 %2093  ;;  %v2674_v44 = vpack.c.bf16 %v1031_v4, %v1029_v61  ;;  %2997 = vpow2.f32 %v1560_v58  ;;  %v945_v12 = vadd.f32 %v944_v35, %v3945_v37 }
 0x4dd   :  { %v2992_v8 = vpop.eup %2991  ;;  %v2223_v14 = vsub.f32 %v3576_v3, %v2094_v41  ;;  %2999 = vpow2.f32 %v1562_v57 }
 0x4de   :  { %v2005_v53 = vmul.f32 0.6931472, %v2992_v8  ;;  %2806 = vst [vmem:[%s4214_s5 + $0x30] sm:$0xff] %v2674_v44   ;;  %3001 = vpow2.f32 %v1558_v13 }
 0x4df   :  { %v2994_v34 = vpop.eup %2993 }
 0x4e0   :  { %v2001_v50 = vmul.f32 0.6931472, %v2994_v34  ;;  %v2089_v5 = vpop.permute.xlu1 %2088  ;;  %v2046_v19 = vadd.f32 %v2005_v53, %v4350_v38  ;;  %v4356_v53 = vld [vmem:[#allocation25_spill] sm:$0xff] }
 0x4e1   :  { %v2996_v15 = vpop.eup %2995  ;;  %v2222_v47 = vsub.f32 %v3571_v48, %v2089_v5  ;;  %v1033_v48 = vpop.f32.mrf.mxu1  ;;  %v1507_v41 = vsub.f32 %v3740_v54, %v4356_v53 }
 0x4e2   :  { %v2003_v31 = vmul.f32 0.6931472, %v2996_v15  ;;  %v2044_v46 = vadd.f32 %v2001_v50, %v4351_v29  ;;  %2168 = vperm.xlu2 %2839, %v2046_v19   ;;  %v2220_v29 = vsub.f32 %v3559_v20, %v4039_v0  ;;  %v2998_v32 = vpop.eup %2997  ;;  %v1034_v4 = vadd.f32 %v1033_v48, %v945_v12 }
 0x4e3   :  { %v2739_v51 = vpack.c.bf16 %v2223_v14, %v2222_v47  ;;  %v3000_v8 = vpop.eup %2999  ;;  %v1566_v19 = vmul.f32 1.442695, %v1507_v41  ;;  %v4359_v41 = vld [vmem:[#allocation24_spill] sm:$0xff] }
 0x4e4   :  { %2158 = vperm.xlu0 %2837, %v2044_v46   ;;  %v2045_v38 = vadd.f32 %v2003_v31, %v4352_v33  ;;  %v946_v33 = vpop.f32.mrf.mxu0  ;;  %v4357_v46 = vld [vmem:[#allocation26_spill] sm:$0xff] }
 0x4e5   :  { %2818 = vst [vmem:[%s4215_s6 + $0x18] sm:$0xff] %v2739_v51   ;;  %v947_v16 = vadd.f32 %v946_v33, %v3945_v37  ;;  %v1508_v51 = vsub.f32 %v3750_v21, %v4357_v46 }
 0x4e6   :  { %2163 = vperm.xlu1 %2838, %v2045_v38   ;;  %v2084_v3 = vpop.permute.xlu0 %2083  ;;  %v4358_v38 = vld [vmem:[#allocation21_spill] sm:$0xff] }
 0x4e7   :  { %v2221_v63 = vsub.f32 %v3564_v26, %v2084_v3  ;;  %v3002_v26 = vpop.eup %3001  ;;  %v1506_v48 = vsub.f32 %v3730_v18, %v4358_v38 }
 0x4e8   :  { %v1881_v30 = vpop.permute.xlu1 %1880 }
 0x4e9   :  { %v2734_v10 = vpack.c.bf16 %v2221_v63, %v2220_v29  ;;  %v1952_v59 = vadd.f32 %v2998_v32, %v1881_v30  ;;  %v1035_v0 = vpop.f32.mrf.mxu1  ;;  %v1568_v63 = vmul.f32 1.442695, %v1508_v51 }
 0x4ea   :  { %v1036_v34 = vadd.f32 %v1035_v0, %v947_v16 }
 0x4eb   :  { %2817 = vst [vmem:[%s4215_s6 + $0x10] sm:$0xff] %v2734_v10   ;;  %3003 = vlog2.f32 %v1952_v59  ;;  %v1564_v10 = vmul.f32 1.442695, %v1506_v48 }
 0x4ec   :  { %v1883_v58 = vpop.permute.xlu2 %1882  ;;  %v2679_v50 = vpack.c.bf16 %v1036_v34, %v1034_v4  ;;  %v949_v15 = vpop.f32.mrf.mxu0 }
 0x4ed   :  { %v1953_v20 = vadd.f32 %v3000_v8, %v1883_v58  ;;  %v950_v8 = vadd.f32 %v949_v15, %v3945_v37 }
 0x4ee   :  { %v1879_v61 = vpop.permute.xlu0 %1878  ;;  %2807 = vst [vmem:[%s4214_s5 + $0x38] sm:$0xff] %v2679_v50  }
 0x4ef   :  { %3005 = vlog2.f32 %v1953_v20  ;;  %v1951_v42 = vadd.f32 %v3002_v26, %v1879_v61  ;;  %v1509_v61 = vsub.f32 %v3764_v24, %v4359_v41 }
 0x4f1   :  { %v3004_v5 = vpop.eup %3003  ;;  %3007 = vlog2.f32 %v1951_v42  ;;  %v2104_v14 = vpop.permute.xlu1 %2103 }
 0x4f2   :  { %v2009_v44 = vmul.f32 0.6931472, %v3004_v5  ;;  %v1038_v31 = vpop.f32.mrf.mxu1  ;;  %3009 = vpow2.f32 %v1566_v19  ;;  %v2225_v26 = vsub.f32 %v3587_v1, %v2104_v14  ;;  %v1570_v1 = vmul.f32 1.442695, %v1509_v61 }
 0x4f3   :  { %3011 = vpow2.f32 %v1568_v63 }
 0x4f4   :  { %v2048_v47 = vadd.f32 %v2009_v44, %v4353_v52  ;;  %v951_v52 = vpop.f32.mrf.mxu0  ;;  %v4094_v59 = vpop.permute.xlu2 %2108 }
 0x4f5   :  { %v3006_v57 = vpop.eup %3005  ;;  %v952_v58 = vadd.f32 %v951_v52, %v3945_v37 }
 0x4f6   :  { %v2011_v35 = vmul.f32 0.6931472, %v3006_v57  ;;  %2178 = vperm.xlu1 %2838, %v2048_v47   ;;  %v4360_v57 = vld [vmem:[#allocation27_spill] sm:$0xff] }
 0x4f7   :  { %v3008_v13 = vpop.eup %3007 }
 0x4f8   :  { %v2007_v3 = vmul.f32 0.6931472, %v3008_v13  ;;  %v2049_v29 = vadd.f32 %v2011_v35, %v4354_v7  ;;  %v3010_v30 = vpop.eup %3009  ;;  %v1039_v7 = vadd.f32 %v1038_v31, %v950_v8  ;;  %v1510_v31 = vsub.f32 %v3771_v49, %v4360_v57 }
 0x4f9   :  { %v3012_v50 = vpop.eup %3011 }
 0x4fa   :  { %2183 = vperm.xlu2 %2839, %v2049_v29   ;;  %v2047_v32 = vadd.f32 %v2007_v3, %v4355_v43  ;;  %v1040_v16 = vpop.f32.mrf.mxu1  ;;  %v1572_v13 = vmul.f32 1.442695, %v1510_v31 }
 0x4fb   :  { %v1041_v0 = vadd.f32 %v1040_v16, %v952_v58 }
 0x4fc   :  { %v1887_v33 = vpop.permute.xlu1 %1886  ;;  %2173 = vperm.xlu0 %2837, %v2047_v32   ;;  %v954_v42 = vpop.f32.mrf.mxu0 }
 0x4fd   :  { %v1955_v12 = vadd.f32 %v3010_v30, %v1887_v33  ;;  %v2684_v4 = vpack.c.bf16 %v1041_v0, %v1039_v7  ;;  %v955_v3 = vadd.f32 %v954_v42, %v3945_v37 }
 0x4fe   :  { %v2099_v20 = vpop.permute.xlu0 %2098 }
 0x4ff   :  { %3013 = vlog2.f32 %v1955_v12  ;;  %v2224_v43 = vsub.f32 %v3582_v25, %v2099_v20  ;;  %2808 = vst [vmem:[%s4214_s5 + $0x40] sm:$0xff] %v2684_v4   ;;  %v4361_v12 = vld [vmem:[#allocation28_spill] sm:$0xff] }
 0x500   :  { %3015 = vpow2.f32 %v1564_v10 }
 0x501   :  { %v2744_v34 = vpack.c.bf16 %v2225_v26, %v2224_v43 }
 0x502   :  { %v1043_v44 = vpop.f32.mrf.mxu1 }
 0x503   :  { %2819 = vst [vmem:[%s4215_s6 + $0x20] sm:$0xff] %v2744_v34   ;;  %v1044_v33 = vadd.f32 %v1043_v44, %v955_v3 }
 0x504   :  { %v1889_v5 = vpop.permute.xlu2 %1888  ;;  %v956_v48 = vpop.f32.mrf.mxu0 }
 0x505   :  { %v3014_v19 = vpop.eup %3013  ;;  %v1956_v25 = vadd.f32 %v3012_v50, %v1889_v5  ;;  %v957_v29 = vadd.f32 %v956_v48, %v3945_v37 }
 0x506   :  { %v3016_v15 = vpop.eup %3015  ;;  %v2015_v14 = vmul.f32 0.6931472, %v3014_v19  ;;  %v1885_v47 = vpop.permute.xlu0 %1884 }
 0x507   :  { %3017 = vlog2.f32 %v1956_v25  ;;  %v1954_v51 = vadd.f32 %v3016_v15, %v1885_v47 }
 0x508   :  { %3019 = vpow2.f32 %v1570_v1  ;;  %v2051_v35 = vadd.f32 %v2015_v14, %v4356_v53  ;;  %v1511_v53 = vsub.f32 %v3786_v55, %v4361_v12 }
 0x509   :  { %3021 = vlog2.f32 %v1954_v51 }
 0x50a   :  { %2193 = vperm.xlu1 %2838, %v2051_v35   ;;  %v1045_v32 = vpop.f32.mrf.mxu1  ;;  %3023 = vpow2.f32 %v1572_v13  ;;  %v1574_v43 = vmul.f32 1.442695, %v1511_v53 }
 0x50b   :  { %v1046_v8 = vadd.f32 %v1045_v32, %v957_v29 }
 0x50c   :  { %v959_v61 = vpop.f32.mrf.mxu0 }
 0x50d   :  { %v3018_v63 = vpop.eup %3017  ;;  %v2689_v0 = vpack.c.bf16 %v1046_v8, %v1044_v33  ;;  %v960_v14 = vadd.f32 %v959_v61, %v3945_v37 }
 0x50e   :  { %v3020_v52 = vpop.eup %3019  ;;  %v2017_v30 = vmul.f32 0.6931472, %v3018_v63  ;;  %v1891_v10 = vpop.permute.xlu0 %1890 }
 0x50f   :  { %v3022_v58 = vpop.eup %3021  ;;  %v1957_v16 = vadd.f32 %v3020_v52, %v1891_v10  ;;  %2809 = vst [vmem:[%s4214_s5 + $0x48] sm:$0xff] %v2689_v0  }
 0x510   :  { %v2013_v20 = vmul.f32 0.6931472, %v3022_v58  ;;  %v2052_v7 = vadd.f32 %v2017_v30, %v4357_v46  ;;  %v3024_v4 = vpop.eup %3023  ;;  %v2226_v46 = vsub.f32 %v3593_v23, %v4094_v59 }
 0x511   :  { %3025 = vlog2.f32 %v1957_v16 }
 0x512   :  { %2198 = vperm.xlu2 %2839, %v2052_v7   ;;  %v2050_v26 = vadd.f32 %v2013_v20, %v4358_v38  ;;  %v1048_v42 = vpop.f32.mrf.mxu1  ;;  %3027 = vpow2.f32 %v1574_v43 }
 0x514   :  { %2188 = vperm.xlu0 %2837, %v2050_v26   ;;  %v961_v15 = vpop.f32.mrf.mxu0 }
 0x515   :  { %v1893_v34 = vpop.permute.xlu1 %1892  ;;  %v962_v47 = vadd.f32 %v961_v15, %v3945_v37 }
 0x516   :  { %v1958_v50 = vadd.f32 %v3024_v4, %v1893_v34  ;;  %v2114_v1 = vpop.permute.xlu0 %2113 }
 0x517   :  { %v3026_v5 = vpop.eup %3025  ;;  %v2227_v19 = vsub.f32 %v3598_v27, %v2114_v1  ;;  %v1049_v27 = vadd.f32 %v1048_v42, %v960_v14 }
 0x518   :  { %v2019_v38 = vmul.f32 0.6931472, %v3026_v5  ;;  %3029 = vlog2.f32 %v1958_v50  ;;  %v3028_v31 = vpop.eup %3027 }
 0x519   :  { %v2749_v25 = vpack.c.bf16 %v2227_v19, %v2226_v46 }
 0x51a   :  { %v2053_v44 = vadd.f32 %v2019_v38, %v4359_v41  ;;  %v1050_v35 = vpop.f32.mrf.mxu1 }
 0x51b   :  { %2820 = vst [vmem:[%s4215_s6 + $0x28] sm:$0xff] %v2749_v25   ;;  %v1051_v48 = vadd.f32 %v1050_v35, %v962_v47 }
 0x51c   :  { %2203 = vperm.xlu0 %2837, %v2053_v44   ;;  %v1895_v51 = vpop.permute.xlu2 %1894  ;;  %v964_v63 = vpop.f32.mrf.mxu0 }
 0x51d   :  { %v1959_v59 = vadd.f32 %v3028_v31, %v1895_v51  ;;  %v2694_v3 = vpack.c.bf16 %v1051_v48, %v1049_v27  ;;  %v2119_v29 = vpop.permute.xlu1 %2118  ;;  %v965_v20 = vadd.f32 %v964_v63, %v3945_v37 }
 0x51e   :  { %v3030_v23 = vpop.eup %3029  ;;  %v2228_v30 = vsub.f32 %v3604_v45, %v2119_v29 }
 0x51f   :  { %v2021_v13 = vmul.f32 0.6931472, %v3030_v23  ;;  %3031 = vlog2.f32 %v1959_v59  ;;  %2810 = vst [vmem:[%s4214_s5 + $0x50] sm:$0xff] %v2694_v3  }
 0x521   :  { %v2054_v41 = vadd.f32 %v2021_v13, %v4360_v57 }
 0x522   :  { %v1053_v33 = vpop.f32.mrf.mxu1 }
 0x523   :  { %2208 = vperm.xlu1 %2838, %v2054_v41   ;;  %v1054_v26 = vadd.f32 %v1053_v33, %v965_v20 }
 0x524   :  { %v2124_v32 = vpop.permute.xlu2 %2123  ;;  %v966_v57 = vpop.f32.mrf.mxu0 }
 0x525   :  { %v3032_v52 = vpop.eup %3031  ;;  %v2229_v10 = vsub.f32 %v3609_v17, %v2124_v32  ;;  %v2134_v16 = vpop.permute.xlu1 %2133  ;;  %v967_v7 = vadd.f32 %v966_v57, %v3945_v37 }
 0x526   :  { %v2023_v8 = vmul.f32 0.6931472, %v3032_v52  ;;  %v2231_v43 = vsub.f32 %v3620_v36, %v2134_v16 }
 0x527   :  { %v2754_v58 = vpack.c.bf16 %v2229_v10, %v2228_v30 }
 0x528   :  { %v2055_v53 = vadd.f32 %v2023_v8, %v4361_v12 }
 0x529   :  { %2821 = vst [vmem:[%s4215_s6 + $0x30] sm:$0xff] %v2754_v58  }
 0x52a   :  { %2213 = vperm.xlu2 %2839, %v2055_v53   ;;  %v1055_v17 = vpop.f32.mrf.mxu1 }
 0x52b   :  { %v1056_v12 = vadd.f32 %v1055_v17, %v967_v7 }
 0x52c   :  { %v2139_v0 = vpop.permute.xlu2 %2138  ;;  %v969_v42 = vpop.f32.mrf.mxu0 }
 0x52d   :  { %v2699_v34 = vpack.c.bf16 %v1056_v12, %v1054_v26  ;;  %v970_v38 = vadd.f32 %v969_v42, %v3945_v37  ;;  %v2232_v51 = vsub.f32 %v3630_v60, %v2139_v0 }
 0x52e   :  { %v2129_v45 = vpop.permute.xlu0 %2128 }
 0x52f   :  { %v2230_v61 = vsub.f32 %v3615_v6, %v2129_v45  ;;  %2811 = vst [vmem:[%s4214_s5 + $0x58] sm:$0xff] %v2699_v34  }
 0x531   :  { %v2759_v4 = vpack.c.bf16 %v2231_v43, %v2230_v61 }
 0x532   :  { %v1058_v5 = vpop.f32.mrf.mxu1 }
 0x533   :  { %2822 = vst [vmem:[%s4215_s6 + $0x38] sm:$0xff] %v2759_v4   ;;  %v1059_v44 = vadd.f32 %v1058_v5, %v970_v38 }
 0x534   :  { %v2154_v50 = vpop.permute.xlu2 %2153  ;;  %v971_v19 = vpop.f32.mrf.mxu0 }
 0x535   :  { %v2235_v46 = vsub.f32 %v3660_v28, %v2154_v50  ;;  %v972_v25 = vadd.f32 %v971_v19, %v3945_v37 }
 0x536   :  { %v2149_v1 = vpop.permute.xlu1 %2148 }
 0x537   :  { %v2234_v36 = vsub.f32 %v3650_v11, %v2149_v1 }
 0x539   :  { %v2769_v6 = vpack.c.bf16 %v2235_v46, %v2234_v36 }
 0x53a   :  { %v1060_v15 = vpop.f32.mrf.mxu1 }
 0x53b   :  { %2824 = vst [vmem:[%s4215_s6 + $0x48] sm:$0xff] %v2769_v6   ;;  %v1061_v14 = vadd.f32 %v1060_v15, %v972_v25 }
 0x53c   :  { %v974_v28 = vpop.f32.mrf.mxu0  ;;  %v2169_v53 = vpop.permute.xlu2 %2168 }
 0x53d   :  { %v2704_v47 = vpack.c.bf16 %v1061_v14, %v1059_v44  ;;  %v975_v35 = vadd.f32 %v974_v28, %v3945_v37  ;;  %v2238_v1 = vsub.f32 %v3690_v2, %v2169_v53 }
 0x53f   :  { %2812 = vst [vmem:[%s4214_s5 + $0x60] sm:$0xff] %v2704_v47  }
 0x542   :  { %v1063_v11 = vpop.f32.mrf.mxu1 }
 0x543   :  { %v1064_v48 = vadd.f32 %v1063_v11, %v975_v35 }
 0x544   :  { %v976_v27 = vpop.f32.mrf.mxu0 }
 0x545   :  { %v977_v13 = vadd.f32 %v976_v27, %v3945_v37 }
 0x546   :  { %v2144_v31 = vpop.permute.xlu0 %2143 }
 0x547   :  { %v2233_v23 = vsub.f32 %v3640_v40, %v2144_v31 }
 0x549   :  { %v2764_v59 = vpack.c.bf16 %v2233_v23, %v2232_v51 }
 0x54a   :  { %v1065_v41 = vpop.f32.mrf.mxu1 }
 0x54b   :  { %2823 = vst [vmem:[%s4215_s6 + $0x40] sm:$0xff] %v2764_v59   ;;  %v1066_v3 = vadd.f32 %v1065_v41, %v977_v13 }
 0x54c   :  { %v979_v60 = vpop.f32.mrf.mxu0 }
 0x54d   :  { %v2709_v29 = vpack.c.bf16 %v1066_v3, %v1064_v48  ;;  %v980_v8 = vadd.f32 %v979_v60, %v3945_v37 }
 0x54f   :  { %2813 = vst [vmem:[%s4214_s5 + $0x68] sm:$0xff] %v2709_v29  }
 0x552   :  { %v1068_v63 = vpop.f32.mrf.mxu1 }
 0x553   :  { %v1069_v57 = vadd.f32 %v1068_v63, %v980_v8 }
 0x554   :  { %v981_v33 = vpop.f32.mrf.mxu0 }
 0x555   :  { %v982_v58 = vadd.f32 %v981_v33, %v3945_v37 }
 0x556   :  { %v2159_v40 = vpop.permute.xlu0 %2158 }
 0x557   :  { %v2236_v52 = vsub.f32 %v3670_v39, %v2159_v40 }
 0x558   :  { %v2164_v32 = vpop.permute.xlu1 %2163 }
 0x559   :  { %v2237_v30 = vsub.f32 %v3680_v9, %v2164_v32  ;;  %v2184_v9 = vpop.permute.xlu2 %2183 }
 0x55a   :  { %v1070_v16 = vpop.f32.mrf.mxu1  ;;  %v2241_v26 = vsub.f32 %v3720_v22, %v2184_v9 }
 0x55b   :  { %v2774_v10 = vpack.c.bf16 %v2237_v30, %v2236_v52  ;;  %v1071_v20 = vadd.f32 %v1070_v16, %v982_v58 }
 0x55c   :  { %v984_v39 = vpop.f32.mrf.mxu0 }
 0x55d   :  { %2825 = vst [vmem:[%s4215_s6 + $0x50] sm:$0xff] %v2774_v10   ;;  %v2714_v7 = vpack.c.bf16 %v1071_v20, %v1069_v57  ;;  %v985_v12 = vadd.f32 %v984_v39, %v3945_v37 }
 0x55f   :  { %2814 = vst [vmem:[%s4214_s5 + $0x70] sm:$0xff] %v2714_v7  }
 0x562   :  { %v1073_v0 = vpop.f32.mrf.mxu1 }
 0x563   :  { %v1074_v42 = vadd.f32 %v1073_v0, %v985_v12 }
 0x564   :  { %v986_v61 = vpop.f32.mrf.mxu0 }
 0x565   :  { %v987_v4 = vadd.f32 %v986_v61, %v3945_v37 }
 0x568   :  { %v2179_v45 = vpop.permute.xlu1 %2178 }
 0x569   :  { %v2240_v17 = vsub.f32 %v3710_v56, %v2179_v45 }
 0x56a   :  { %v1075_v50 = vpop.f32.mrf.mxu1 }
 0x56b   :  { %v2784_v43 = vpack.c.bf16 %v2241_v26, %v2240_v17  ;;  %v1076_v22 = vadd.f32 %v1075_v50, %v987_v4 }
 0x56c   :  { %v2199_v38 = vpop.permute.xlu2 %2198 }
 0x56d   :  { %2827 = vst [vmem:[%s4215_s6 + $0x60] sm:$0xff] %v2784_v43   ;;  %v2719_v56 = vpack.c.bf16 %v1076_v22, %v1074_v42  ;;  %v2244_v25 = vsub.f32 %v3750_v21, %v2199_v38 }
 0x56e   :  { %v2174_v34 = vpop.permute.xlu0 %2173 }
 0x56f   :  { %v2239_v5 = vsub.f32 %v3700_v62, %v2174_v34  ;;  %2815 = vst [vmem:[%s4214_s5 + $0x78] sm:$0xff] %v2719_v56  }
 0x571   :  { %v2779_v46 = vpack.c.bf16 %v2239_v5, %v2238_v1 }
 0x573   :  { %2826 = vst [vmem:[%s4215_s6 + $0x58] sm:$0xff] %v2779_v46  }
 0x57c   :  { %v2194_v37 = vpop.permute.xlu1 %2193 }
 0x57d   :  { %v2243_v6 = vsub.f32 %v3740_v54, %v2194_v37 }
 0x584   :  { %v2214_v14 = vpop.permute.xlu2 %2213 }
 0x586   :  { %v2189_v36 = vpop.permute.xlu0 %2188 }
 0x587   :  { %v2242_v19 = vsub.f32 %v3730_v18, %v2189_v36  ;;  %v2247_v18 = vsub.f32 %v3786_v55, %v2214_v14 }
 0x589   :  { %v2789_v2 = vpack.c.bf16 %v2243_v6, %v2242_v19 }
 0x58b   :  { %2828 = vst [vmem:[%s4215_s6 + $0x68] sm:$0xff] %v2789_v2  }
 0x58e   :  { %v2204_v62 = vpop.permute.xlu0 %2203 }
 0x58f   :  { %v2245_v44 = vsub.f32 %v3764_v24, %v2204_v62 }
 0x591   :  { %v2794_v15 = vpack.c.bf16 %v2245_v44, %v2244_v25 }
 0x593   :  { %2829 = vst [vmem:[%s4215_s6 + $0x70] sm:$0xff] %v2794_v15  }
 0x595   :  { %v2209_v54 = vpop.permute.xlu1 %2208 }
 0x596   :  { %v2246_v47 = vsub.f32 %v3771_v49, %v2209_v54 }
 0x598   :  { %v2799_v28 = vpack.c.bf16 %v2247_v18, %v2246_v47 }
 0x59a   :  { %2830 = vst [vmem:[%s4215_s6 + $0x78] sm:$0xff] %v2799_v28  }
 0x59b   :  { %2320 = vsyncpa [#allocation3], 1 }

</bundles_post_ra>
